<compile_context>
chip_gen: v7x
topology: tpu7x:2x2x1
jax: 0.10.0
libtpu: 0.0.40
codegen_flags: <defaults>
</compile_context>

<pallas_src>
import jax
import jax.numpy as jnp
from jax import lax
from jax.experimental import pallas as pl
from jax.experimental.pallas import tpu as pltpu

# ----------------------------- config ---------------------------------------
INPUT_SIZE = 1024
HIDDEN_SIZE = 512
# len(author_to_idx_mapping) is not given in the snippet; pick a small fixed value.
NUM_CLASSES = 16
C_PAD = 128          # classifier head padded to a full lane group
BATCH = 8
LN_EPS = 1e-5        # nn.LayerNorm default


def _round_up(x, m):
    return (x + m - 1) // m * m


# ----------------------------- kernel ---------------------------------------
def _layernorm(x, gamma, beta):
    mu = jnp.mean(x, axis=-1, keepdims=True)
    xc = x - mu
    var = jnp.mean(xc * xc, axis=-1, keepdims=True)
    return xc * lax.rsqrt(var + LN_EPS) * gamma + beta


def text_classifier_kernel(
    x_ref,
    w1_ref, b1_ref, g1_ref, bb1_ref,
    w2_ref, b2_ref, g2_ref, bb2_ref,
    w3_ref, b3_ref,
    o_ref,
):
    # fc1 (bf16 MXU, f32 accumulate) + ln1 + relu (f32 VPU/EUP math)
    h = jnp.dot(x_ref[...], w1_ref[...], preferred_element_type=jnp.float32)
    h = h + b1_ref[...]
    h = _layernorm(h, g1_ref[...], bb1_ref[...])
    h = jnp.maximum(h, 0.0)

    # fc2 + ln2 + relu
    h = jnp.dot(h.astype(jnp.bfloat16), w2_ref[...],
                preferred_element_type=jnp.float32) + b2_ref[...]
    h = _layernorm(h, g2_ref[...], bb2_ref[...])
    h = jnp.maximum(h, 0.0)

    # fc3 (head padded to C_PAD lanes) + masked softmax(dim=-1)
    logits = jnp.dot(h.astype(jnp.bfloat16), w3_ref[...],
                     preferred_element_type=jnp.float32) + b3_ref[...]
    col = lax.broadcasted_iota(jnp.int32, logits.shape, 1)
    logits = jnp.where(col < NUM_CLASSES, logits, -1e30)
    m = jnp.max(logits, axis=-1, keepdims=True)
    e = jnp.exp(logits - m)
    denom = jnp.sum(e, axis=-1, keepdims=True)
    o_ref[...] = (e * pl.reciprocal(denom, approx=False)).astype(o_ref.dtype)


# ----------------------------- wrapper ---------------------------------------
def prepare_kernel_params(p):
    """Cast weights to bf16 and zero-pad the classifier head to C_PAD lanes."""
    pad = C_PAD - p["w3"].shape[1]
    return dict(
        w1=p["w1"].astype(jnp.bfloat16),
        b1=p["b1"], g1=p["g1"], bb1=p["bb1"],
        w2=p["w2"].astype(jnp.bfloat16),
        b2=p["b2"], g2=p["g2"], bb2=p["bb2"],
        w3=jnp.pad(p["w3"], ((0, 0), (0, pad))).astype(jnp.bfloat16),
        b3=jnp.pad(p["b3"], ((0, 0), (0, pad))),
    )


def text_classifier(x, kp):
    B, D_in = x.shape
    assert D_in == INPUT_SIZE
    H1 = kp["w1"].shape[1]
    H2 = kp["w2"].shape[1]

    # Fill the MXU M dimension (128 rows) when the batch is large enough;
    # otherwise pad the (degenerate) small batch up to a multiple of 8.
    tile_b = 128 if B >= 128 else _round_up(B, 8)
    B_pad = _round_up(B, tile_b)

    x_p = x.astype(jnp.bfloat16)
    if B_pad != B:
        x_p = jnp.pad(x_p, ((0, B_pad - B), (0, 0)))

    def rep(shape):
        # grid-invariant parameter block: whole array at every grid step
        nd = len(shape)
        return pl.BlockSpec(shape, lambda i, nd=nd: (0,) * nd)

    grid = (B_pad // tile_b,)
    in_specs = [
        pl.BlockSpec((tile_b, D_in), lambda i: (i, 0)),     # x tile
        rep((D_in, H1)), rep((1, H1)), rep((1, H1)), rep((1, H1)),
        rep((H1, H2)),  rep((1, H2)), rep((1, H2)), rep((1, H2)),
        rep((H2, C_PAD)), rep((1, C_PAD)),
    ]
    out_specs = pl.BlockSpec((tile_b, C_PAD), lambda i: (i, 0))

    out = pl.pallas_call(
        text_classifier_kernel,
        out_shape=jax.ShapeDtypeStruct((B_pad, C_PAD), jnp.float32),
        grid_spec=pltpu.PrefetchScalarGridSpec(
            num_scalar_prefetch=0,
            grid=grid,
            in_specs=in_specs,
            out_specs=out_specs,
        ),
        compiler_params=pltpu.CompilerParams(
            dimension_semantics=("parallel",),
        ),
    )(
        x_p,
        kp["w1"], kp["b1"], kp["g1"], kp["bb1"],
        kp["w2"], kp["b2"], kp["g2"], kp["bb2"],
        kp["w3"], kp["b3"],
    )
    return out[:B, :NUM_CLASSES]


# ----------------------------- params / reference -----------------------------
def init_params(key):
    H1, H2, C = HIDDEN_SIZE, HIDDEN_SIZE // 2, NUM_CLASSES
    ks = jax.random.split(key, 6)

    def linear(kw, kb, d_in, d_out):
        # matches nn.Linear init bound 1/sqrt(d_in)
        bound = 1.0 / jnp.sqrt(d_in)
        w = jax.random.uniform(kw, (d_in, d_out), jnp.float32, -bound, bound)
        b = jax.random.uniform(kb, (1, d_out), jnp.float32, -bound, bound)
        return w, b

    w1, b1 = linear(ks[0], ks[1], INPUT_SIZE, H1)
    w2, b2 = linear(ks[2], ks[3], H1, H2)
    w3, b3 = linear(ks[4], ks[5], H2, C)
    return dict(
        w1=w1, b1=b1, g1=jnp.ones((1, H1), jnp.float32), bb1=jnp.zeros((1, H1), jnp.float32),
        w2=w2, b2=b2, g2=jnp.ones((1, H2), jnp.float32), bb2=jnp.zeros((1, H2), jnp.float32),
        w3=w3, b3=b3,
    )


def reference(x, p):
    def ln(h, g, b):
        mu = jnp.mean(h, -1, keepdims=True)
        var = jnp.mean((h - mu) ** 2, -1, keepdims=True)
        return (h - mu) / jnp.sqrt(var + LN_EPS) * g + b

    h = jnp.maximum(ln(x @ p["w1"] + p["b1"], p["g1"], p["bb1"]), 0.0)
    h = jnp.maximum(ln(h @ p["w2"] + p["b2"], p["g2"], p["bb2"]), 0.0)
    return jax.nn.softmax(h @ p["w3"] + p["b3"], axis=-1)


# ----------------------------- main -------------------------------------------
if __name__ == "__main__":
    key = jax.random.PRNGKey(0)
    kx, kp = jax.random.split(key)
    x = jax.random.normal(kx, (BATCH, INPUT_SIZE), jnp.float32)
    params = init_params(kp)
    kparams = prepare_kernel_params(params)

    out = text_classifier(x, kparams)
    out = jax.block_until_ready(out)

    ref = reference(x, params)  # full-f32 reference
    assert out.shape == (BATCH, NUM_CLASSES)
    assert jnp.allclose(jnp.sum(out, axis=-1), 1.0, atol=1e-5)
    # bf16 weights with f32 accumulation -> relaxed tolerance vs f32 reference
    assert jnp.allclose(out, ref, atol=2e-2), float(jnp.max(jnp.abs(out - ref)))
    print("KERNEL_OK")
</pallas_src>

<mosaic_0001>
module attributes {stable_mosaic.version = 11 : i64} {
  func.func @text_classifier_kernel(%arg0: i32, %arg1: memref<8x1024xbf16, #tpu.memory_space<vmem>>, %arg2: memref<1024x512xbf16, #tpu.memory_space<vmem>>, %arg3: memref<1x512xf32, #tpu.memory_space<vmem>>, %arg4: memref<1x512xf32, #tpu.memory_space<vmem>>, %arg5: memref<1x512xf32, #tpu.memory_space<vmem>>, %arg6: memref<512x256xbf16, #tpu.memory_space<vmem>>, %arg7: memref<1x256xf32, #tpu.memory_space<vmem>>, %arg8: memref<1x256xf32, #tpu.memory_space<vmem>>, %arg9: memref<1x256xf32, #tpu.memory_space<vmem>>, %arg10: memref<256x128xbf16, #tpu.memory_space<vmem>>, %arg11: memref<1x128xf32, #tpu.memory_space<vmem>>, %arg12: memref<8x128xf32, #tpu.memory_space<vmem>>) attributes {dimension_semantics = [#tpu.dimension_semantics<parallel>], iteration_bounds = array<i64: 1>, scalar_prefetch = 0 : i64, scratch_operands = 0 : i64, tpu.core_type = #tpu.core_type<tc>, window_params = [{transform_indices = @transform_0, window_bounds = array<i64: 8, 1024>}, {pipeline_mode = #tpu.pipeline_mode<synchronous>, transform_indices = @transform_1, window_bounds = array<i64: 1024, 512>}, {pipeline_mode = #tpu.pipeline_mode<synchronous>, transform_indices = @transform_2, window_bounds = array<i64: 1, 512>}, {pipeline_mode = #tpu.pipeline_mode<synchronous>, transform_indices = @transform_3, window_bounds = array<i64: 1, 512>}, {pipeline_mode = #tpu.pipeline_mode<synchronous>, transform_indices = @transform_4, window_bounds = array<i64: 1, 512>}, {pipeline_mode = #tpu.pipeline_mode<synchronous>, transform_indices = @transform_5, window_bounds = array<i64: 512, 256>}, {pipeline_mode = #tpu.pipeline_mode<synchronous>, transform_indices = @transform_6, window_bounds = array<i64: 1, 256>}, {pipeline_mode = #tpu.pipeline_mode<synchronous>, transform_indices = @transform_7, window_bounds = array<i64: 1, 256>}, {pipeline_mode = #tpu.pipeline_mode<synchronous>, transform_indices = @transform_8, window_bounds = array<i64: 1, 256>}, {pipeline_mode = #tpu.pipeline_mode<synchronous>, transform_indices = @transform_9, window_bounds = array<i64: 256, 128>}, {pipeline_mode = #tpu.pipeline_mode<synchronous>, transform_indices = @transform_10, window_bounds = array<i64: 1, 128>}, {transform_indices = @transform_11, window_bounds = array<i64: 8, 128>}]} {
    %c0 = arith.constant 0 : index
    %c0_0 = arith.constant 0 : index
    %0 = vector.load %arg1[%c0, %c0_0] : memref<8x1024xbf16, #tpu.memory_space<vmem>>, vector<8x1024xbf16>
    %c0_1 = arith.constant 0 : index
    %c0_2 = arith.constant 0 : index
    %1 = vector.load %arg2[%c0_1, %c0_2] : memref<1024x512xbf16, #tpu.memory_space<vmem>>, vector<1024x512xbf16>
    %cst = arith.constant dense<0.000000e+00> : vector<8x512xf32>
    %2 = tpu.matmul %0, %1, %cst {dimension_numbers = #tpu.dot_dimension_numbers<[1], [0], [0], [1], [0, 0, 1, 1], [], []>} : vector<8x1024xbf16>, vector<1024x512xbf16>, vector<8x512xf32> -> vector<8x512xf32>
    %c0_3 = arith.constant 0 : index
    %c0_4 = arith.constant 0 : index
    %3 = vector.load %arg3[%c0_3, %c0_4] : memref<1x512xf32, #tpu.memory_space<vmem>>, vector<1x512xf32>
    %4 = vector.broadcast %3 : vector<1x512xf32> to vector<8x512xf32>
    %5 = arith.addf %2, %4 : vector<8x512xf32>
    %c0_5 = arith.constant 0 : index
    %c0_6 = arith.constant 0 : index
    %6 = vector.load %arg4[%c0_5, %c0_6] : memref<1x512xf32, #tpu.memory_space<vmem>>, vector<1x512xf32>
    %c0_7 = arith.constant 0 : index
    %c0_8 = arith.constant 0 : index
    %7 = vector.load %arg5[%c0_7, %c0_8] : memref<1x512xf32, #tpu.memory_space<vmem>>, vector<1x512xf32>
    %cst_9 = arith.constant dense<0.000000e+00> : vector<8xf32>
    %8 = vector.multi_reduction <add>, %5, %cst_9 [1] : vector<8x512xf32> to vector<8xf32>
    %9 = vector.shape_cast %8 : vector<8xf32> to vector<8x1xf32>
    %cst_10 = arith.constant 5.120000e+02 : f32
    %10 = vector.broadcast %cst_10 : f32 to vector<8x1xf32>
    %11 = arith.divf %9, %10 : vector<8x1xf32>
    %12 = vector.broadcast %11 : vector<8x1xf32> to vector<8x512xf32>
    %13 = arith.subf %5, %12 : vector<8x512xf32>
    %14 = arith.mulf %13, %13 : vector<8x512xf32>
    %cst_11 = arith.constant dense<0.000000e+00> : vector<8xf32>
    %15 = vector.multi_reduction <add>, %14, %cst_11 [1] : vector<8x512xf32> to vector<8xf32>
    %16 = vector.shape_cast %15 : vector<8xf32> to vector<8x1xf32>
    %cst_12 = arith.constant 5.120000e+02 : f32
    %17 = vector.broadcast %cst_12 : f32 to vector<8x1xf32>
    %18 = arith.divf %16, %17 : vector<8x1xf32>
    %cst_13 = arith.constant 9.99999974E-6 : f32
    %19 = vector.broadcast %cst_13 : f32 to vector<8x1xf32>
    %20 = arith.addf %18, %19 : vector<8x1xf32>
    %21 = math.rsqrt %20 : vector<8x1xf32>
    %22 = vector.broadcast %21 : vector<8x1xf32> to vector<8x512xf32>
    %23 = arith.mulf %13, %22 : vector<8x512xf32>
    %24 = vector.broadcast %6 : vector<1x512xf32> to vector<8x512xf32>
    %25 = arith.mulf %23, %24 : vector<8x512xf32>
    %26 = vector.broadcast %7 : vector<1x512xf32> to vector<8x512xf32>
    %27 = arith.addf %25, %26 : vector<8x512xf32>
    %cst_14 = arith.constant 0.000000e+00 : f32
    %28 = vector.broadcast %cst_14 : f32 to vector<8x512xf32>
    %29 = arith.maximumf %27, %28 : vector<8x512xf32>
    %30 = arith.truncf %29 : vector<8x512xf32> to vector<8x512xbf16>
    %c0_15 = arith.constant 0 : index
    %c0_16 = arith.constant 0 : index
    %31 = vector.load %arg6[%c0_15, %c0_16] : memref<512x256xbf16, #tpu.memory_space<vmem>>, vector<512x256xbf16>
    %cst_17 = arith.constant dense<0.000000e+00> : vector<8x256xf32>
    %32 = tpu.matmul %30, %31, %cst_17 {dimension_numbers = #tpu.dot_dimension_numbers<[1], [0], [0], [1], [0, 0, 1, 1], [], []>} : vector<8x512xbf16>, vector<512x256xbf16>, vector<8x256xf32> -> vector<8x256xf32>
    %c0_18 = arith.constant 0 : index
    %c0_19 = arith.constant 0 : index
    %33 = vector.load %arg7[%c0_18, %c0_19] : memref<1x256xf32, #tpu.memory_space<vmem>>, vector<1x256xf32>
    %34 = vector.broadcast %33 : vector<1x256xf32> to vector<8x256xf32>
    %35 = arith.addf %32, %34 : vector<8x256xf32>
    %c0_20 = arith.constant 0 : index
    %c0_21 = arith.constant 0 : index
    %36 = vector.load %arg8[%c0_20, %c0_21] : memref<1x256xf32, #tpu.memory_space<vmem>>, vector<1x256xf32>
    %c0_22 = arith.constant 0 : index
    %c0_23 = arith.constant 0 : index
    %37 = vector.load %arg9[%c0_22, %c0_23] : memref<1x256xf32, #tpu.memory_space<vmem>>, vector<1x256xf32>
    %cst_24 = arith.constant dense<0.000000e+00> : vector<8xf32>
    %38 = vector.multi_reduction <add>, %35, %cst_24 [1] : vector<8x256xf32> to vector<8xf32>
    %39 = vector.shape_cast %38 : vector<8xf32> to vector<8x1xf32>
    %cst_25 = arith.constant 2.560000e+02 : f32
    %40 = vector.broadcast %cst_25 : f32 to vector<8x1xf32>
    %41 = arith.divf %39, %40 : vector<8x1xf32>
    %42 = vector.broadcast %41 : vector<8x1xf32> to vector<8x256xf32>
    %43 = arith.subf %35, %42 : vector<8x256xf32>
    %44 = arith.mulf %43, %43 : vector<8x256xf32>
    %cst_26 = arith.constant dense<0.000000e+00> : vector<8xf32>
    %45 = vector.multi_reduction <add>, %44, %cst_26 [1] : vector<8x256xf32> to vector<8xf32>
    %46 = vector.shape_cast %45 : vector<8xf32> to vector<8x1xf32>
    %cst_27 = arith.constant 2.560000e+02 : f32
    %47 = vector.broadcast %cst_27 : f32 to vector<8x1xf32>
    %48 = arith.divf %46, %47 : vector<8x1xf32>
    %cst_28 = arith.constant 9.99999974E-6 : f32
    %49 = vector.broadcast %cst_28 : f32 to vector<8x1xf32>
    %50 = arith.addf %48, %49 : vector<8x1xf32>
    %51 = math.rsqrt %50 : vector<8x1xf32>
    %52 = vector.broadcast %51 : vector<8x1xf32> to vector<8x256xf32>
    %53 = arith.mulf %43, %52 : vector<8x256xf32>
    %54 = vector.broadcast %36 : vector<1x256xf32> to vector<8x256xf32>
    %55 = arith.mulf %53, %54 : vector<8x256xf32>
    %56 = vector.broadcast %37 : vector<1x256xf32> to vector<8x256xf32>
    %57 = arith.addf %55, %56 : vector<8x256xf32>
    %cst_29 = arith.constant 0.000000e+00 : f32
    %58 = vector.broadcast %cst_29 : f32 to vector<8x256xf32>
    %59 = arith.maximumf %57, %58 : vector<8x256xf32>
    %60 = arith.truncf %59 : vector<8x256xf32> to vector<8x256xbf16>
    %c0_30 = arith.constant 0 : index
    %c0_31 = arith.constant 0 : index
    %61 = vector.load %arg10[%c0_30, %c0_31] : memref<256x128xbf16, #tpu.memory_space<vmem>>, vector<256x128xbf16>
    %cst_32 = arith.constant dense<0.000000e+00> : vector<8x128xf32>
    %62 = tpu.matmul %60, %61, %cst_32 {dimension_numbers = #tpu.dot_dimension_numbers<[1], [0], [0], [1], [0, 0, 1, 1], [], []>} : vector<8x256xbf16>, vector<256x128xbf16>, vector<8x128xf32> -> vector<8x128xf32>
    %c0_33 = arith.constant 0 : index
    %c0_34 = arith.constant 0 : index
    %63 = vector.load %arg11[%c0_33, %c0_34] : memref<1x128xf32, #tpu.memory_space<vmem>>, vector<1x128xf32>
    %64 = vector.broadcast %63 : vector<1x128xf32> to vector<8x128xf32>
    %65 = arith.addf %62, %64 : vector<8x128xf32>
    %66 = tpu.iota {dimensions = array<i32: 1>} : vector<8x128xi32>
    %c16_i32 = arith.constant 16 : i32
    %67 = vector.broadcast %c16_i32 : i32 to vector<8x128xi32>
    %68 = arith.cmpi slt, %66, %67 : vector<8x128xi32>
    %cst_35 = arith.constant -1.000000e+30 : f32
    %69 = vector.broadcast %cst_35 : f32 to vector<8x128xf32>
    %70 = arith.select %68, %65, %69 : vector<8x128xi1>, vector<8x128xf32>
    %cst_36 = arith.constant dense<0xFF800000> : vector<8xf32>
    %71 = vector.multi_reduction <maximumf>, %70, %cst_36 [1] : vector<8x128xf32> to vector<8xf32>
    %72 = vector.shape_cast %71 : vector<8xf32> to vector<8x1xf32>
    %73 = vector.broadcast %72 : vector<8x1xf32> to vector<8x128xf32>
    %74 = arith.subf %70, %73 : vector<8x128xf32>
    %75 = math.exp %74 : vector<8x128xf32>
    %cst_37 = arith.constant dense<0.000000e+00> : vector<8xf32>
    %76 = vector.multi_reduction <add>, %75, %cst_37 [1] : vector<8x128xf32> to vector<8xf32>
    %77 = vector.shape_cast %76 : vector<8xf32> to vector<8x1xf32>
    %78 = tpu.reciprocal %77 : vector<8x1xf32> -> vector<8x1xf32>
    %79 = vector.broadcast %78 : vector<8x1xf32> to vector<8x128xf32>
    %80 = arith.mulf %75, %79 : vector<8x128xf32>
    %c0_38 = arith.constant 0 : index
    %c0_39 = arith.constant 0 : index
    %81 = vector.load %arg12[%c0_38, %c0_39] : memref<8x128xf32, #tpu.memory_space<vmem>>, vector<8x128xf32>
    tpu.vector_store %arg12[%c0_38, %c0_39], %80 {strides = array<i32>} : memref<8x128xf32, #tpu.memory_space<vmem>>, vector<8x128xf32>,
    return
  }
  func.func @transform_0(%arg0: i32) -> (i32, i32) {
    %c0_i32 = arith.constant 0 : i32
    %c0_i32_0 = arith.constant 0 : i32
    return %arg0, %c0_i32 : i32, i32
  }
  func.func @transform_1(%arg0: i32) -> (i32, i32) {
    %c0_i32 = arith.constant 0 : i32
    %c0_i32_0 = arith.constant 0 : i32
    %c0_i32_1 = arith.constant 0 : i32
    return %c0_i32, %c0_i32_0 : i32, i32
  }
  func.func @transform_2(%arg0: i32) -> (i32, i32) {
    %c0_i32 = arith.constant 0 : i32
    %c0_i32_0 = arith.constant 0 : i32
    %c0_i32_1 = arith.constant 0 : i32
    return %c0_i32, %c0_i32_0 : i32, i32
  }
  func.func @transform_3(%arg0: i32) -> (i32, i32) {
    %c0_i32 = arith.constant 0 : i32
    %c0_i32_0 = arith.constant 0 : i32
    %c0_i32_1 = arith.constant 0 : i32
    return %c0_i32, %c0_i32_0 : i32, i32
  }
  func.func @transform_4(%arg0: i32) -> (i32, i32) {
    %c0_i32 = arith.constant 0 : i32
    %c0_i32_0 = arith.constant 0 : i32
    %c0_i32_1 = arith.constant 0 : i32
    return %c0_i32, %c0_i32_0 : i32, i32
  }
  func.func @transform_5(%arg0: i32) -> (i32, i32) {
    %c0_i32 = arith.constant 0 : i32
    %c0_i32_0 = arith.constant 0 : i32
    %c0_i32_1 = arith.constant 0 : i32
    return %c0_i32, %c0_i32_0 : i32, i32
  }
  func.func @transform_6(%arg0: i32) -> (i32, i32) {
    %c0_i32 = arith.constant 0 : i32
    %c0_i32_0 = arith.constant 0 : i32
    %c0_i32_1 = arith.constant 0 : i32
    return %c0_i32, %c0_i32_0 : i32, i32
  }
  func.func @transform_7(%arg0: i32) -> (i32, i32) {
    %c0_i32 = arith.constant 0 : i32
    %c0_i32_0 = arith.constant 0 : i32
    %c0_i32_1 = arith.constant 0 : i32
    return %c0_i32, %c0_i32_0 : i32, i32
  }
  func.func @transform_8(%arg0: i32) -> (i32, i32) {
    %c0_i32 = arith.constant 0 : i32
    %c0_i32_0 = arith.constant 0 : i32
    %c0_i32_1 = arith.constant 0 : i32
    return %c0_i32, %c0_i32_0 : i32, i32
  }
  func.func @transform_9(%arg0: i32) -> (i32, i32) {
    %c0_i32 = arith.constant 0 : i32
    %c0_i32_0 = arith.constant 0 : i32
    %c0_i32_1 = arith.constant 0 : i32
    return %c0_i32, %c0_i32_0 : i32, i32
  }
  func.func @transform_10(%arg0: i32) -> (i32, i32) {
    %c0_i32 = arith.constant 0 : i32
    %c0_i32_0 = arith.constant 0 : i32
    %c0_i32_1 = arith.constant 0 : i32
    return %c0_i32, %c0_i32_0 : i32, i32
  }
  func.func @transform_11(%arg0: i32) -> (i32, i32) {
    %c0_i32 = arith.constant 0 : i32
    %c0_i32_0 = arith.constant 0 : i32
    return %arg0, %c0_i32 : i32, i32
  }
}

</mosaic_0001>

<bundles_post_ra>
// kernel: tpu_custom_call.1
= control target key start
LH: loop header
LB: loop body
LE: loop exit
PB: predicated region body
PF: predicated region fallthrough
CT: control target
= control target key end

     0   :  { %16 = vsyncpa [#allocation3], 0  ;;  %s4098_s0 = inlined_call_operand.hbm [shape: bf16[8,1024], index: 0, kind: input, shape index: {}]   ;;  %s4099_s1 = inlined_call_operand.hbm [shape: bf16[1024,512], index: 1, kind: input, shape index: {}]   ;;  %s4100_s2 = inlined_call_operand.vmem [shape: f32[1,512], index: 2, kind: input, shape index: {}]   ;;  %s4101_s3 = inlined_call_operand.vmem [shape: f32[1,512], index: 3, kind: input, shape index: {}]   ;;  %s4102_s4 = inlined_call_operand.vmem [shape: f32[1,512], index: 4, kind: input, shape index: {}]   ;;  %s4103_s5 = inlined_call_operand.hbm [shape: bf16[512,256], index: 5, kind: input, shape index: {}]   ;;  %s4104_s6 = inlined_call_operand.vmem [shape: f32[1,256], index: 6, kind: input, shape index: {}]   ;;  %s4105_s7 = inlined_call_operand.vmem [shape: f32[1,256], index: 7, kind: input, shape index: {}]   ;;  %s4106_s8 = inlined_call_operand.vmem [shape: f32[1,256], index: 8, kind: input, shape index: {}]   ;;  %s4107_s9 = inlined_call_operand.hbm [shape: bf16[256,128], index: 9, kind: input, shape index: {}]   ;;  %s4108_s10 = inlined_call_operand.vmem [shape: f32[1,128], index: 10, kind: input, shape index: {}]   ;;  %s4109_s11 = inlined_call_operand.hbm [shape: f32[8,128], index: 11, kind: output, shape index: {}]  }
   0x1   :  { %17 = vsyncpa [#allocation6], 0 }
   0x2   :  { %18 = vsyncpa [#allocation9], 0 }
   0x3   :  { %19 = vsyncpa [#allocation4], 0  ;;  %s3871_s17 = smov [#allocation5]   ;;  %s3753_s21 = scalar_lea.hbm %s4099_s1, 32768 }
   0x4   :  { %s35_s18 = sshll.u32 %s3871_s17, 4  ;;  %p3754_p0 = scmp.ne.s32.totalorder %s4099_s1, %s3753_s21  ;;  %s36_s18 = int_to_ptr.vmem [resolvable:$true] %s35_s18 }
   0x5   :  { %p3757_p1 = scmp.lt.u32.totalorder %s3753_s21, %s4099_s1 }
   0x7   :  { %p3759_p2 = pnand %p3757_p1, %p3754_p0 }
   0x9   :  { %3762 = shalt.err (!%p3759_p2)
}
   0xa   :  { %s3763_s26 = scalar_lea.vmem %s36_s18, 32768  ;;  %p3768_p4 = scmp.lt.s32.totalorder %s36_s18, %s36_s18 }
   0xb   :  { %p3764_p3 = scmp.ne.s32.totalorder %s36_s18, %s3763_s26  ;;  %p3769_p5 = scmp.lt.s32.totalorder %s3763_s26, %s3763_s26 }
   0xd   :  { %p3770_p6 = por %p3769_p5, %p3768_p4 }
   0xf   :  { %p3771_p7 = pnand %p3770_p6, %p3764_p3 }
  0x11   :  { %3774 = shalt.err (!%p3771_p7)
}
  0x12   :  { %s3872_s27 = smov 256   ;;  %s3873_s28 = smov 16  }
  0x13   :  { %41 = dma.hbm_to_vmem [thread:$0]  %s4099_s1, 32768, %s36_s18, [#allocation6], %s3872_s27, %s3872_s27, %s3873_s28  }
  0x14   :  { %s3874_s12 = smov [#allocation2]   ;;  %s3875_s14 = smov [#allocation7]  }
  0x15   :  { %s26_s13 = sshll.u32 %s3874_s12, 4  ;;  %s53_s15 = sshll.u32 %s3875_s14, 4  ;;  %s27_s13 = int_to_ptr.vmem [resolvable:$true] %s26_s13  ;;  %s54_s15 = int_to_ptr.vmem [resolvable:$true] %s53_s15 }
  0x16   :  { %s3775_s19 = scalar_lea.hbm %s4098_s0, 512 }
  0x17   :  { %p3776_p8 = scmp.ne.s32.totalorder %s4098_s0, %s3775_s19  ;;  %p3779_p9 = scmp.lt.u32.totalorder %s3775_s19, %s4098_s0 }
  0x19   :  { %p3781_p10 = pnand %p3779_p9, %p3776_p8 }
  0x1b   :  { %3784 = shalt.err (!%p3781_p10)
}
  0x1c   :  { %s3785_s1 = scalar_lea.vmem %s27_s13, 512  ;;  %p3790_p12 = scmp.lt.s32.totalorder %s27_s13, %s27_s13 }
  0x1d   :  { %p3786_p11 = scmp.ne.s32.totalorder %s27_s13, %s3785_s1  ;;  %p3791_p13 = scmp.lt.s32.totalorder %s3785_s1, %s3785_s1 }
  0x1f   :  { %p3792_p0 = por %p3791_p13, %p3790_p12 }
  0x21   :  { %p3793_p1 = pnand %p3792_p0, %p3786_p11 }
  0x23   :  { %3796 = shalt.err (!%p3793_p1)
}
  0x24   :  { %29 = dma.hbm_to_vmem [thread:$0]  %s4098_s0, 512, %s27_s13, [#allocation3]  }
  0x25   :  { %s3797_s27 = scalar_lea.hbm %s4103_s5, 8192 }
  0x26   :  { %p3798_p2 = scmp.ne.s32.totalorder %s4103_s5, %s3797_s27  ;;  %p3801_p3 = scmp.lt.u32.totalorder %s3797_s27, %s4103_s5 }
  0x28   :  { %p3803_p4 = pnand %p3801_p3, %p3798_p2 }
  0x2a   :  { %3806 = shalt.err (!%p3803_p4)
}
  0x2b   :  { %s3807_s14 = scalar_lea.vmem %s54_s15, 8192  ;;  %p3812_p6 = scmp.lt.s32.totalorder %s54_s15, %s54_s15 }
  0x2c   :  { %p3808_p5 = scmp.ne.s32.totalorder %s54_s15, %s3807_s14  ;;  %p3813_p7 = scmp.lt.s32.totalorder %s3807_s14, %s3807_s14 }
  0x2e   :  { %p3814_p8 = por %p3813_p7, %p3812_p6 }
  0x30   :  { %p3815_p9 = pnand %p3814_p8, %p3808_p5 }
  0x32   :  { %3818 = shalt.err (!%p3815_p9)
}
  0x33   :  { %s3876_s0 = smov 128   ;;  %s3877_s13 = smov 8  }
  0x34   :  { %59 = dma.hbm_to_vmem [thread:$0]  %s4103_s5, 8192, %s54_s15, [#allocation6], %s3876_s0, %s3876_s0, %s3877_s13  }
  0x35   :  { %s3878_s19 = smov [#allocation8]   ;;  %s3819_s23 = scalar_lea.hbm %s4107_s9, 2048 }
  0x36   :  { %s71_s20 = sshll.u32 %s3878_s19, 4  ;;  %p3820_p10 = scmp.ne.s32.totalorder %s4107_s9, %s3819_s23  ;;  %s72_s20 = int_to_ptr.vmem [resolvable:$true] %s71_s20 }
  0x37   :  { %p3823_p11 = scmp.lt.u32.totalorder %s3819_s23, %s4107_s9 }
  0x39   :  { %p3825_p12 = pnand %p3823_p11, %p3820_p10 }
  0x3b   :  { %3828 = shalt.err (!%p3825_p12)
}
  0x3c   :  { %s3829_s26 = scalar_lea.vmem %s72_s20, 2048  ;;  %p3834_p0 = scmp.lt.s32.totalorder %s72_s20, %s72_s20 }
  0x3d   :  { %p3830_p13 = scmp.ne.s32.totalorder %s72_s20, %s3829_s26  ;;  %p3835_p1 = scmp.lt.s32.totalorder %s3829_s26, %s3829_s26 }
  0x3f   :  { %p3836_p2 = por %p3835_p1, %p3834_p0 }
  0x41   :  { %p3837_p3 = pnand %p3836_p2, %p3830_p13 }
  0x43   :  { %3840 = shalt.err (!%p3837_p3)
}
  0x44   :  { %s3879_s5 = smov 64   ;;  %s3880_s15 = smov 4  }
  0x45   :  { %77 = dma.hbm_to_vmem [thread:$0]  %s4107_s9, 2048, %s72_s20, [#allocation9], %s3879_s5, %s3879_s5, %s3880_s15  }
  0x46   :  { %3863 = dma.done.wait [#allocation3], 512  }
  0x47   :  { %3864 = vsyncadd [#allocation3], 4294966784 }
  0x48   :  { %3865 = dma.done.wait [#allocation6], 40960  }
  0x49   :  { %3866 = vsyncadd [#allocation6], 4294926336 }
  0x4a   :  { %3867 = dma.done.wait [#allocation9], 2048  }
  0x4b   :  { %3868 = vsyncadd [#allocation9], 4294965248  ;;  %v3241_v0 = vld [vmem:[#allocation5 + $0x4] ss:$16 sps:$4 sm:$0xff]   ;;  %v3245_v2 = vld [vmem:[#allocation5] ss:$16 sps:$4 sm:$0xff]  }
  0x4c   :  { %v3243_v1 = vld [vmem:[#allocation5 + $0x204] ss:$16 sps:$4 sm:$0xff]   ;;  %1683 = vmatprep.subr.bf16.mxu1 %v3241_v0  ;;  %v3246_v3 = vld [vmem:[#allocation5 + $0x200] ss:$16 sps:$4 sm:$0xff]   ;;  %v94_v48 = vld [vmem:[#allocation2 + $0x8] sm:$0xff]  ;;  %s3881_s17 = smov [#allocation10]  }
  0x4d   :  { %1724 = vmatprep.subr.bf16.mxu0 %v3243_v1  ;;  %v3247_v4 = vld [vmem:[#allocation5 + $0x24] ss:$16 sps:$4 sm:$0xff]   ;;  %1684 = vmatpush1.bf16.msra.mxu1 %v3245_v2  ;;  %v3251_v6 = vld [vmem:[#allocation5 + $0x20] ss:$16 sps:$4 sm:$0xff]   ;;  %v3992_v51 = vcombine.high %v94_v48, %v94_v48  ;;  %s2820_s19 = sshll.u32 %s3881_s17, 4  ;;  %s2821_s19 = int_to_ptr.vmem [resolvable:$true] %s2820_s19 }
  0x4e   :  { %1725 = vmatpush1.bf16.msra.mxu0 %v3246_v3  ;;  %v3249_v5 = vld [vmem:[#allocation5 + $0x224] ss:$16 sps:$4 sm:$0xff]   ;;  %1685 = vmatprep.subr.bf16.mxu1 %v3247_v4  ;;  %v3252_v7 = vld [vmem:[#allocation5 + $0x220] ss:$16 sps:$4 sm:$0xff]   ;;  %p3846_p5 = scmp.lt.s32.totalorder %s2821_s19, %s2821_s19 }
  0x4f   :  { %1726 = vmatprep.subr.bf16.mxu0 %v3249_v5  ;;  %v3253_v8 = vld [vmem:[#allocation5 + $0x44] ss:$16 sps:$4 sm:$0xff]   ;;  %v3257_v10 = vld [vmem:[#allocation5 + $0x40] ss:$16 sps:$4 sm:$0xff]   ;;  %1756 = vmatprep.mubr.bf16.mxu0 %v3992_v51  ;;  %v3346_v5 = vld [vmem:[#allocation5 + $0xc] ss:$16 sps:$4 sm:$0xff]  }
  0x50   :  { %v3255_v9 = vld [vmem:[#allocation5 + $0x244] ss:$16 sps:$4 sm:$0xff]   ;;  %v3258_v11 = vld [vmem:[#allocation5 + $0x240] ss:$16 sps:$4 sm:$0xff]  }
  0x51   :  { %1686 = vmatpush1.bf16.msra.mxu1 %v3251_v6  ;;  %v3259_v12 = vld [vmem:[#allocation5 + $0x64] ss:$16 sps:$4 sm:$0xff]   ;;  %v3263_v14 = vld [vmem:[#allocation5 + $0x60] ss:$16 sps:$4 sm:$0xff]  }
  0x52   :  { %1727 = vmatpush1.bf16.msra.mxu0 %v3252_v7  ;;  %1687 = vmatprep.subr.bf16.mxu1 %v3253_v8  ;;  %v3261_v13 = vld [vmem:[#allocation5 + $0x264] ss:$16 sps:$4 sm:$0xff]   ;;  %v3264_v15 = vld [vmem:[#allocation5 + $0x260] ss:$16 sps:$4 sm:$0xff]   ;;  %v3998_v7 = vcombine.low %v94_v48, %v94_v48 }
  0x53   :  { %1728 = vmatprep.subr.bf16.mxu0 %v3255_v9  ;;  %v3265_v16 = vld [vmem:[#allocation5 + $0x84] ss:$16 sps:$4 sm:$0xff]   ;;  %v3269_v18 = vld [vmem:[#allocation5 + $0x80] ss:$16 sps:$4 sm:$0xff]   ;;  %v3344_v9 = vld [vmem:[#allocation5 + $0x8] ss:$16 sps:$4 sm:$0xff]  }
  0x54   :  { %v3267_v17 = vld [vmem:[#allocation5 + $0x284] ss:$16 sps:$4 sm:$0xff]   ;;  %v3270_v19 = vld [vmem:[#allocation5 + $0x280] ss:$16 sps:$4 sm:$0xff]  }
  0x55   :  { %1688 = vmatpush1.bf16.msra.mxu1 %v3257_v10  ;;  %v3271_v20 = vld [vmem:[#allocation5 + $0xa4] ss:$16 sps:$4 sm:$0xff]   ;;  %v3275_v22 = vld [vmem:[#allocation5 + $0xa0] ss:$16 sps:$4 sm:$0xff]  }
  0x56   :  { %1729 = vmatpush1.bf16.msra.mxu0 %v3258_v11  ;;  %1689 = vmatprep.subr.bf16.mxu1 %v3259_v12  ;;  %v3273_v21 = vld [vmem:[#allocation5 + $0x2a4] ss:$16 sps:$4 sm:$0xff]   ;;  %v3276_v23 = vld [vmem:[#allocation5 + $0x2a0] ss:$16 sps:$4 sm:$0xff]   ;;  %v3352_v11 = vld [vmem:[#allocation5 + $0x2c] ss:$16 sps:$4 sm:$0xff]  }
  0x57   :  { %1730 = vmatprep.subr.bf16.mxu0 %v3261_v13  ;;  %v3277_v24 = vld [vmem:[#allocation5 + $0xc4] ss:$16 sps:$4 sm:$0xff]   ;;  %v3281_v26 = vld [vmem:[#allocation5 + $0xc0] ss:$16 sps:$4 sm:$0xff]   ;;  %v3350_v13 = vld [vmem:[#allocation5 + $0x28] ss:$16 sps:$4 sm:$0xff]  }
  0x58   :  { %v3279_v25 = vld [vmem:[#allocation5 + $0x2c4] ss:$16 sps:$4 sm:$0xff]   ;;  %v3282_v27 = vld [vmem:[#allocation5 + $0x2c0] ss:$16 sps:$4 sm:$0xff]  }
  0x59   :  { %1690 = vmatpush1.bf16.msra.mxu1 %v3263_v14  ;;  %v3283_v28 = vld [vmem:[#allocation5 + $0xe4] ss:$16 sps:$4 sm:$0xff]   ;;  %v3287_v30 = vld [vmem:[#allocation5 + $0xe0] ss:$16 sps:$4 sm:$0xff]  }
  0x5a   :  { %1731 = vmatpush1.bf16.msra.mxu0 %v3264_v15  ;;  %1691 = vmatprep.subr.bf16.mxu1 %v3265_v16  ;;  %v3285_v29 = vld [vmem:[#allocation5 + $0x2e4] ss:$16 sps:$4 sm:$0xff]   ;;  %v3288_v31 = vld [vmem:[#allocation5 + $0x2e0] ss:$16 sps:$4 sm:$0xff]   ;;  %v3358_v15 = vld [vmem:[#allocation5 + $0x4c] ss:$16 sps:$4 sm:$0xff]  }
  0x5b   :  { %1732 = vmatprep.subr.bf16.mxu0 %v3267_v17  ;;  %v3289_v32 = vld [vmem:[#allocation5 + $0x104] ss:$16 sps:$4 sm:$0xff]   ;;  %v3293_v34 = vld [vmem:[#allocation5 + $0x100] ss:$16 sps:$4 sm:$0xff]   ;;  %v3356_v17 = vld [vmem:[#allocation5 + $0x48] ss:$16 sps:$4 sm:$0xff]  }
  0x5c   :  { %v3291_v33 = vld [vmem:[#allocation5 + $0x304] ss:$16 sps:$4 sm:$0xff]   ;;  %v3294_v35 = vld [vmem:[#allocation5 + $0x300] ss:$16 sps:$4 sm:$0xff]  }
  0x5d   :  { %1692 = vmatpush1.bf16.msra.mxu1 %v3269_v18  ;;  %v3295_v36 = vld [vmem:[#allocation5 + $0x124] ss:$16 sps:$4 sm:$0xff]   ;;  %v3299_v38 = vld [vmem:[#allocation5 + $0x120] ss:$16 sps:$4 sm:$0xff]  }
  0x5e   :  { %1733 = vmatpush1.bf16.msra.mxu0 %v3270_v19  ;;  %1693 = vmatprep.subr.bf16.mxu1 %v3271_v20  ;;  %v3297_v37 = vld [vmem:[#allocation5 + $0x324] ss:$16 sps:$4 sm:$0xff]   ;;  %v3300_v39 = vld [vmem:[#allocation5 + $0x320] ss:$16 sps:$4 sm:$0xff]   ;;  %v3364_v19 = vld [vmem:[#allocation5 + $0x6c] ss:$16 sps:$4 sm:$0xff]  }
  0x5f   :  { %1734 = vmatprep.subr.bf16.mxu0 %v3273_v21  ;;  %v3301_v40 = vld [vmem:[#allocation5 + $0x144] ss:$16 sps:$4 sm:$0xff]   ;;  %v3305_v42 = vld [vmem:[#allocation5 + $0x140] ss:$16 sps:$4 sm:$0xff]   ;;  %v3362_v21 = vld [vmem:[#allocation5 + $0x68] ss:$16 sps:$4 sm:$0xff]  }
  0x60   :  { %v3303_v41 = vld [vmem:[#allocation5 + $0x344] ss:$16 sps:$4 sm:$0xff]   ;;  %v3306_v43 = vld [vmem:[#allocation5 + $0x340] ss:$16 sps:$4 sm:$0xff]  }
  0x61   :  { %1694 = vmatpush1.bf16.msra.mxu1 %v3275_v22  ;;  %v3307_v44 = vld [vmem:[#allocation5 + $0x164] ss:$16 sps:$4 sm:$0xff]   ;;  %v3311_v49 = vld [vmem:[#allocation5 + $0x160] ss:$16 sps:$4 sm:$0xff]  }
  0x62   :  { %1735 = vmatpush1.bf16.msra.mxu0 %v3276_v23  ;;  %1695 = vmatprep.subr.bf16.mxu1 %v3277_v24  ;;  %v3309_v45 = vld [vmem:[#allocation5 + $0x364] ss:$16 sps:$4 sm:$0xff]   ;;  %v3312_v50 = vld [vmem:[#allocation5 + $0x360] ss:$16 sps:$4 sm:$0xff]   ;;  %v3370_v23 = vld [vmem:[#allocation5 + $0x8c] ss:$16 sps:$4 sm:$0xff]  }
  0x63   :  { %1736 = vmatprep.subr.bf16.mxu0 %v3279_v25  ;;  %v93_v46 = vld [vmem:[#allocation2] sm:$0xff]  ;;  %v3368_v25 = vld [vmem:[#allocation5 + $0x88] ss:$16 sps:$4 sm:$0xff]  }
  0x64   :  { %v3990_v47 = vcombine.high %v93_v46, %v93_v46  ;;  %v3313_v52 = vld [vmem:[#allocation5 + $0x184] ss:$16 sps:$4 sm:$0xff]   ;;  %v3317_v54 = vld [vmem:[#allocation5 + $0x180] ss:$16 sps:$4 sm:$0xff]   ;;  %v3996_v6 = vcombine.low %v93_v46, %v93_v46 }
  0x65   :  { %1696 = vmatpush1.bf16.msra.mxu1 %v3281_v26  ;;  %v3315_v53 = vld [vmem:[#allocation5 + $0x384] ss:$16 sps:$4 sm:$0xff]   ;;  %v3318_v55 = vld [vmem:[#allocation5 + $0x380] ss:$16 sps:$4 sm:$0xff]  }
  0x66   :  { %1737 = vmatpush1.bf16.msra.mxu0 %v3282_v27  ;;  %1697 = vmatprep.subr.bf16.mxu1 %v3283_v28  ;;  %v3319_v56 = vld [vmem:[#allocation5 + $0x1a4] ss:$16 sps:$4 sm:$0xff]   ;;  %v3323_v58 = vld [vmem:[#allocation5 + $0x1a0] ss:$16 sps:$4 sm:$0xff]   ;;  %v3376_v27 = vld [vmem:[#allocation5 + $0xac] ss:$16 sps:$4 sm:$0xff]  }
  0x67   :  { %1738 = vmatprep.subr.bf16.mxu0 %v3285_v29  ;;  %1715 = vmatprep.mubr.bf16.mxu1 %v3990_v47  ;;  %v3321_v57 = vld [vmem:[#allocation5 + $0x3a4] ss:$16 sps:$4 sm:$0xff]   ;;  %v3324_v59 = vld [vmem:[#allocation5 + $0x3a0] ss:$16 sps:$4 sm:$0xff]   ;;  %v3374_v29 = vld [vmem:[#allocation5 + $0xa8] ss:$16 sps:$4 sm:$0xff]  }
  0x68   :  { %v3325_v60 = vld [vmem:[#allocation5 + $0x1c4] ss:$16 sps:$4 sm:$0xff]   ;;  %v3329_v62 = vld [vmem:[#allocation5 + $0x1c0] ss:$16 sps:$4 sm:$0xff]  }
  0x69   :  { %1698 = vmatpush1.bf16.msra.mxu1 %v3287_v30  ;;  %v3327_v61 = vld [vmem:[#allocation5 + $0x3c4] ss:$16 sps:$4 sm:$0xff]   ;;  %v3330_v63 = vld [vmem:[#allocation5 + $0x3c0] ss:$16 sps:$4 sm:$0xff]  }
  0x6a   :  { %1739 = vmatpush1.bf16.msra.mxu0 %v3288_v31  ;;  %1699 = vmatprep.subr.bf16.mxu1 %v3289_v32  ;;  %v3331_v0 = vld [vmem:[#allocation5 + $0x1e4] ss:$16 sps:$4 sm:$0xff]   ;;  %v3335_v2 = vld [vmem:[#allocation5 + $0x1e0] ss:$16 sps:$4 sm:$0xff]   ;;  %v3382_v31 = vld [vmem:[#allocation5 + $0xcc] ss:$16 sps:$4 sm:$0xff]  }
  0x6b   :  { %1740 = vmatprep.subr.bf16.mxu0 %v3291_v33  ;;  %v3333_v1 = vld [vmem:[#allocation5 + $0x3e4] ss:$16 sps:$4 sm:$0xff]   ;;  %v3336_v3 = vld [vmem:[#allocation5 + $0x3e0] ss:$16 sps:$4 sm:$0xff]  }
  0x6c   :  { %v3343_v4 = vld [vmem:[#allocation5 + $0x404] ss:$16 sps:$4 sm:$0xff]   ;;  %v3341_v8 = vld [vmem:[#allocation5 + $0x400] ss:$16 sps:$4 sm:$0xff]  }
  0x6d   :  { %1700 = vmatpush1.bf16.msra.mxu1 %v3293_v34  ;;  %v3349_v10 = vld [vmem:[#allocation5 + $0x424] ss:$16 sps:$4 sm:$0xff]   ;;  %v3347_v12 = vld [vmem:[#allocation5 + $0x420] ss:$16 sps:$4 sm:$0xff]  }
  0x6e   :  { %1741 = vmatpush1.bf16.msra.mxu0 %v3294_v35  ;;  %1701 = vmatprep.subr.bf16.mxu1 %v3295_v36  ;;  %v3355_v14 = vld [vmem:[#allocation5 + $0x444] ss:$16 sps:$4 sm:$0xff]   ;;  %v3353_v16 = vld [vmem:[#allocation5 + $0x440] ss:$16 sps:$4 sm:$0xff]   ;;  %v3380_v35 = vld [vmem:[#allocation5 + $0xc8] ss:$16 sps:$4 sm:$0xff]  }
  0x6f   :  { %1742 = vmatprep.subr.bf16.mxu0 %v3297_v37  ;;  %v3361_v18 = vld [vmem:[#allocation5 + $0x464] ss:$16 sps:$4 sm:$0xff]   ;;  %v3359_v20 = vld [vmem:[#allocation5 + $0x460] ss:$16 sps:$4 sm:$0xff]   ;;  %v3388_v37 = vld [vmem:[#allocation5 + $0xec] ss:$16 sps:$4 sm:$0xff]  }
  0x70   :  { %v3367_v22 = vld [vmem:[#allocation5 + $0x484] ss:$16 sps:$4 sm:$0xff]   ;;  %v3365_v24 = vld [vmem:[#allocation5 + $0x480] ss:$16 sps:$4 sm:$0xff]  }
  0x71   :  { %1702 = vmatpush1.bf16.msra.mxu1 %v3299_v38  ;;  %v3373_v26 = vld [vmem:[#allocation5 + $0x4a4] ss:$16 sps:$4 sm:$0xff]   ;;  %v3371_v28 = vld [vmem:[#allocation5 + $0x4a0] ss:$16 sps:$4 sm:$0xff]  }
  0x72   :  { %1743 = vmatpush1.bf16.msra.mxu0 %v3300_v39  ;;  %1703 = vmatprep.subr.bf16.mxu1 %v3301_v40  ;;  %v3379_v30 = vld [vmem:[#allocation5 + $0x4c4] ss:$16 sps:$4 sm:$0xff]   ;;  %v3377_v33 = vld [vmem:[#allocation5 + $0x4c0] ss:$16 sps:$4 sm:$0xff]   ;;  %v3386_v39 = vld [vmem:[#allocation5 + $0xe8] ss:$16 sps:$4 sm:$0xff]  }
  0x73   :  { %1744 = vmatprep.subr.bf16.mxu0 %v3303_v41  ;;  %v4003_v32 = vld [vmem:[#allocation2 + $0x10] sm:$0xff]  ;;  %v3394_v41 = vld [vmem:[#allocation5 + $0x10c] ss:$16 sps:$4 sm:$0xff]  }
  0x74   :  { %v4007_v34 = vcombine.high %v4003_v32, %v4003_v32  ;;  %v3385_v36 = vld [vmem:[#allocation5 + $0x4e4] ss:$16 sps:$4 sm:$0xff]   ;;  %v3383_v38 = vld [vmem:[#allocation5 + $0x4e0] ss:$16 sps:$4 sm:$0xff]  }
  0x75   :  { %1704 = vmatpush1.bf16.msra.mxu1 %v3305_v42  ;;  %v3391_v40 = vld [vmem:[#allocation5 + $0x504] ss:$16 sps:$4 sm:$0xff]   ;;  %v3389_v42 = vld [vmem:[#allocation5 + $0x500] ss:$16 sps:$4 sm:$0xff]  }
  0x76   :  { %1745 = vmatpush1.bf16.msra.mxu0 %v3306_v43  ;;  %1705 = vmatprep.subr.bf16.mxu1 %v3307_v44  ;;  %v3392_v43 = vld [vmem:[#allocation5 + $0x108] ss:$16 sps:$4 sm:$0xff]   ;;  %v3397_v44 = vld [vmem:[#allocation5 + $0x524] ss:$16 sps:$4 sm:$0xff]   ;;  %v3395_v46 = vld [vmem:[#allocation5 + $0x520] ss:$16 sps:$4 sm:$0xff]  }
  0x77   :  { %1746 = vmatprep.subr.bf16.mxu0 %v3309_v45  ;;  %v3400_v45 = vld [vmem:[#allocation5 + $0x12c] ss:$16 sps:$4 sm:$0xff]   ;;  %v3403_v48 = vld [vmem:[#allocation5 + $0x544] ss:$16 sps:$4 sm:$0xff]  }
  0x79   :  { %1706 = vmatpush1.bf16.msra.mxu1 %v3311_v49  ;;  %v3406_v49 = vld [vmem:[#allocation5 + $0x14c] ss:$16 sps:$4 sm:$0xff]  }
  0x7a   :  { %1747 = vmatpush1.bf16.msra.mxu0 %v3312_v50  ;;  %1707 = vmatprep.subr.bf16.mxu1 %v3313_v52  ;;  %v3401_v50 = vld [vmem:[#allocation5 + $0x540] ss:$16 sps:$4 sm:$0xff]   ;;  %v3404_v52 = vld [vmem:[#allocation5 + $0x148] ss:$16 sps:$4 sm:$0xff]  }
  0x7b   :  { %1748 = vmatprep.subr.bf16.mxu0 %v3315_v53  ;;  %v3409_v53 = vld [vmem:[#allocation5 + $0x564] ss:$16 sps:$4 sm:$0xff]  }
  0x7d   :  { %1708 = vmatpush1.bf16.msra.mxu1 %v3317_v54  ;;  %v3412_v54 = vld [vmem:[#allocation5 + $0x16c] ss:$16 sps:$4 sm:$0xff]  }
  0x7e   :  { %1749 = vmatpush1.bf16.msra.mxu0 %v3318_v55  ;;  %1709 = vmatprep.subr.bf16.mxu1 %v3319_v56  ;;  %v3407_v55 = vld [vmem:[#allocation5 + $0x560] ss:$16 sps:$4 sm:$0xff]   ;;  %v3410_v56 = vld [vmem:[#allocation5 + $0x168] ss:$16 sps:$4 sm:$0xff]  }
  0x7f   :  { %1750 = vmatprep.subr.bf16.mxu0 %v3321_v57  ;;  %v3415_v57 = vld [vmem:[#allocation5 + $0x584] ss:$16 sps:$4 sm:$0xff]  }
  0x81   :  { %1710 = vmatpush1.bf16.msra.mxu1 %v3323_v58  ;;  %v3418_v58 = vld [vmem:[#allocation5 + $0x18c] ss:$16 sps:$4 sm:$0xff]  }
  0x82   :  { %1751 = vmatpush1.bf16.msra.mxu0 %v3324_v59  ;;  %1711 = vmatprep.subr.bf16.mxu1 %v3325_v60  ;;  %v3413_v59 = vld [vmem:[#allocation5 + $0x580] ss:$16 sps:$4 sm:$0xff]   ;;  %v3416_v60 = vld [vmem:[#allocation5 + $0x188] ss:$16 sps:$4 sm:$0xff]  }
  0x83   :  { %1752 = vmatprep.subr.bf16.mxu0 %v3327_v61  ;;  %v3421_v61 = vld [vmem:[#allocation5 + $0x5a4] ss:$16 sps:$4 sm:$0xff]  }
  0x85   :  { %1712 = vmatpush1.bf16.msra.mxu1 %v3329_v62  ;;  %v3424_v62 = vld [vmem:[#allocation5 + $0x1ac] ss:$16 sps:$4 sm:$0xff]  }
  0x86   :  { %1753 = vmatpush1.bf16.msra.mxu0 %v3330_v63  ;;  %1713 = vmatprep.subr.bf16.mxu1 %v3331_v0  ;;  %v3419_v63 = vld [vmem:[#allocation5 + $0x5a0] ss:$16 sps:$4 sm:$0xff]   ;;  %v3422_v0 = vld [vmem:[#allocation5 + $0x1a8] ss:$16 sps:$4 sm:$0xff]  }
  0x87   :  { %1754 = vmatprep.subr.bf16.mxu0 %v3333_v1  ;;  %v3427_v1 = vld [vmem:[#allocation5 + $0x5c4] ss:$16 sps:$4 sm:$0xff]  }
  0x89   :  { %1714 = vmatpush1.bf16.msra.mxu1 %v3335_v2  ;;  %v3430_v2 = vld [vmem:[#allocation5 + $0x1cc] ss:$16 sps:$4 sm:$0xff]  }
  0x8a   :  { %1755 = vmatpush1.bf16.msra.mxu0 %v3336_v3  ;;  %1847 = vmatprep.subr.bf16.mxu1 %v3346_v5  ;;  %v3425_v3 = vld [vmem:[#allocation5 + $0x5c0] ss:$16 sps:$4 sm:$0xff]   ;;  %v3433_v5 = vld [vmem:[#allocation5 + $0x5e4] ss:$16 sps:$4 sm:$0xff]  }
  0x8b   :  { %1765 = vmatprep.subr.bf16.mxu0 %v3343_v4  ;;  %v3428_v4 = vld [vmem:[#allocation5 + $0x1c8] ss:$16 sps:$4 sm:$0xff]  }
  0x8c   :  { %1716 = vmatmul.mubr.bf16.vlgmr.msra.gmra.mrb[0].mxu1 %v3996_v6 }
  0x8d   :  { %1757 = vmatmul.mubr.bf16.vlgmr.msra.gmra.mrb[0].mxu0 %v3998_v7  ;;  %1848 = vmatpush1.bf16.msra.mxu1 %v3344_v9  ;;  %v3431_v9 = vld [vmem:[#allocation5 + $0x5e0] ss:$16 sps:$4 sm:$0xff]  }
  0x8e   :  { %1766 = vmatpush1.bf16.msra.mxu0 %v3341_v8  ;;  %1849 = vmatprep.subr.bf16.mxu1 %v3352_v11  ;;  %v3436_v8 = vld [vmem:[#allocation5 + $0x1ec] ss:$16 sps:$4 sm:$0xff]   ;;  %v3441_v11 = vld [vmem:[#allocation5 + $0x604] ss:$16 sps:$4 sm:$0xff]  }
  0x8f   :  { %1767 = vmatprep.subr.bf16.mxu0 %v3349_v10  ;;  %1879 = vmatprep.mubr.bf16.mxu1 %v3990_v47  ;;  %v3398_v47 = vld [vmem:[#allocation5 + $0x128] ss:$16 sps:$4 sm:$0xff]  }
  0x90   :  { %1797 = vmatprep.mubr.bf16.mxu0 %v4007_v34  ;;  %v3434_v10 = vld [vmem:[#allocation5 + $0x1e8] ss:$16 sps:$4 sm:$0xff]  }
  0x91   :  { %1850 = vmatpush1.bf16.msra.mxu1 %v3350_v13  ;;  %v4012_v13 = vcombine.low %v4003_v32, %v4003_v32  ;;  %v3466_v32 = vld [vmem:[#allocation5 + $0x288] ss:$16 sps:$4 sm:$0xff]  }
  0x92   :  { %1768 = vmatpush1.bf16.msra.mxu0 %v3347_v12  ;;  %1851 = vmatprep.subr.bf16.mxu1 %v3358_v15  ;;  %v3444_v12 = vld [vmem:[#allocation5 + $0x20c] ss:$16 sps:$4 sm:$0xff]   ;;  %v3442_v15 = vld [vmem:[#allocation5 + $0x208] ss:$16 sps:$4 sm:$0xff]  }
  0x93   :  { %1769 = vmatprep.subr.bf16.mxu0 %v3355_v14  ;;  %v3439_v14 = vld [vmem:[#allocation5 + $0x600] ss:$16 sps:$4 sm:$0xff]  }
  0x95   :  { %1852 = vmatpush1.bf16.msra.mxu1 %v3356_v17  ;;  %v3450_v17 = vld [vmem:[#allocation5 + $0x22c] ss:$16 sps:$4 sm:$0xff]  }
  0x96   :  { %1770 = vmatpush1.bf16.msra.mxu0 %v3353_v16  ;;  %1853 = vmatprep.subr.bf16.mxu1 %v3364_v19  ;;  %v3447_v16 = vld [vmem:[#allocation5 + $0x624] ss:$16 sps:$4 sm:$0xff]  }
  0x97   :  { %1771 = vmatprep.subr.bf16.mxu0 %v3361_v18  ;;  %v4014_v18 = vld [vmem:[#allocation2 + $0x18] sm:$0xff] }
  0x98   :  { %v4018_v19 = vcombine.high %v4014_v18, %v4014_v18 }
  0x99   :  { %1854 = vmatpush1.bf16.msra.mxu1 %v3362_v21  ;;  %v3448_v21 = vld [vmem:[#allocation5 + $0x228] ss:$16 sps:$4 sm:$0xff]  }
  0x9a   :  { %1772 = vmatpush1.bf16.msra.mxu0 %v3359_v20  ;;  %1855 = vmatprep.subr.bf16.mxu1 %v3370_v23  ;;  %v3445_v20 = vld [vmem:[#allocation5 + $0x620] ss:$16 sps:$4 sm:$0xff]   ;;  %v3456_v23 = vld [vmem:[#allocation5 + $0x24c] ss:$16 sps:$4 sm:$0xff]  }
  0x9b   :  { %1773 = vmatprep.subr.bf16.mxu0 %v3367_v22  ;;  %v3453_v22 = vld [vmem:[#allocation5 + $0x644] ss:$16 sps:$4 sm:$0xff]  }
  0x9d   :  { %1856 = vmatpush1.bf16.msra.mxu1 %v3368_v25  ;;  %v3454_v25 = vld [vmem:[#allocation5 + $0x248] ss:$16 sps:$4 sm:$0xff]  }
  0x9e   :  { %1774 = vmatpush1.bf16.msra.mxu0 %v3365_v24  ;;  %1857 = vmatprep.subr.bf16.mxu1 %v3376_v27  ;;  %v3451_v24 = vld [vmem:[#allocation5 + $0x640] ss:$16 sps:$4 sm:$0xff]  }
  0x9f   :  { %1775 = vmatprep.subr.bf16.mxu0 %v3373_v26  ;;  %v3459_v26 = vld [vmem:[#allocation5 + $0x664] ss:$16 sps:$4 sm:$0xff]   ;;  %v3457_v27 = vld [vmem:[#allocation5 + $0x660] ss:$16 sps:$4 sm:$0xff]  }
  0xa1   :  { %1858 = vmatpush1.bf16.msra.mxu1 %v3374_v29  ;;  %v3465_v29 = vld [vmem:[#allocation5 + $0x684] ss:$16 sps:$4 sm:$0xff]  }
  0xa2   :  { %1776 = vmatpush1.bf16.msra.mxu0 %v3371_v28  ;;  %1859 = vmatprep.subr.bf16.mxu1 %v3382_v31  ;;  %v3460_v28 = vld [vmem:[#allocation5 + $0x268] ss:$16 sps:$4 sm:$0xff]   ;;  %v3463_v31 = vld [vmem:[#allocation5 + $0x680] ss:$16 sps:$4 sm:$0xff]  }
  0xa3   :  { %1777 = vmatprep.subr.bf16.mxu0 %v3379_v30  ;;  %v3468_v30 = vld [vmem:[#allocation5 + $0x28c] ss:$16 sps:$4 sm:$0xff]  }
  0xa5   :  { %1860 = vmatpush1.bf16.msra.mxu1 %v3380_v35  ;;  %v3469_v35 = vld [vmem:[#allocation5 + $0x6a0] ss:$16 sps:$4 sm:$0xff]  }
  0xa6   :  { %1778 = vmatpush1.bf16.msra.mxu0 %v3377_v33  ;;  %1861 = vmatprep.subr.bf16.mxu1 %v3388_v37  ;;  %v3474_v33 = vld [vmem:[#allocation5 + $0x2ac] ss:$16 sps:$4 sm:$0xff]   ;;  %v3477_v37 = vld [vmem:[#allocation5 + $0x6c4] ss:$16 sps:$4 sm:$0xff]  }
  0xa7   :  { %1779 = vmatprep.subr.bf16.mxu0 %v3385_v36  ;;  %v3472_v36 = vld [vmem:[#allocation5 + $0x2a8] ss:$16 sps:$4 sm:$0xff]  }
  0xa9   :  { %1862 = vmatpush1.bf16.msra.mxu1 %v3386_v39  ;;  %v3475_v39 = vld [vmem:[#allocation5 + $0x6c0] ss:$16 sps:$4 sm:$0xff]  }
  0xaa   :  { %1780 = vmatpush1.bf16.msra.mxu0 %v3383_v38  ;;  %1863 = vmatprep.subr.bf16.mxu1 %v3394_v41  ;;  %v3480_v38 = vld [vmem:[#allocation5 + $0x2cc] ss:$16 sps:$4 sm:$0xff]   ;;  %v3483_v41 = vld [vmem:[#allocation5 + $0x6e4] ss:$16 sps:$4 sm:$0xff]  }
  0xab   :  { %1781 = vmatprep.subr.bf16.mxu0 %v3391_v40  ;;  %v3478_v40 = vld [vmem:[#allocation5 + $0x2c8] ss:$16 sps:$4 sm:$0xff]  }
  0xad   :  { %1864 = vmatpush1.bf16.msra.mxu1 %v3392_v43  ;;  %v3481_v43 = vld [vmem:[#allocation5 + $0x6e0] ss:$16 sps:$4 sm:$0xff]  }
  0xae   :  { %1782 = vmatpush1.bf16.msra.mxu0 %v3389_v42  ;;  %1865 = vmatprep.subr.bf16.mxu1 %v3400_v45  ;;  %v3486_v42 = vld [vmem:[#allocation5 + $0x2ec] ss:$16 sps:$4 sm:$0xff]   ;;  %v3489_v45 = vld [vmem:[#allocation5 + $0x704] ss:$16 sps:$4 sm:$0xff]  }
  0xaf   :  { %1783 = vmatprep.subr.bf16.mxu0 %v3397_v44  ;;  %v3484_v44 = vld [vmem:[#allocation5 + $0x2e8] ss:$16 sps:$4 sm:$0xff]  }
  0xb1   :  { %1866 = vmatpush1.bf16.msra.mxu1 %v3398_v47  ;;  %v3487_v47 = vld [vmem:[#allocation5 + $0x700] ss:$16 sps:$4 sm:$0xff]  }
  0xb2   :  { %1784 = vmatpush1.bf16.msra.mxu0 %v3395_v46  ;;  %1867 = vmatprep.subr.bf16.mxu1 %v3406_v49  ;;  %v3492_v46 = vld [vmem:[#allocation5 + $0x30c] ss:$16 sps:$4 sm:$0xff]   ;;  %v3495_v49 = vld [vmem:[#allocation5 + $0x724] ss:$16 sps:$4 sm:$0xff]  }
  0xb3   :  { %1785 = vmatprep.subr.bf16.mxu0 %v3403_v48  ;;  %v3490_v48 = vld [vmem:[#allocation5 + $0x308] ss:$16 sps:$4 sm:$0xff]  }
  0xb5   :  { %1868 = vmatpush1.bf16.msra.mxu1 %v3404_v52  ;;  %v3493_v52 = vld [vmem:[#allocation5 + $0x720] ss:$16 sps:$4 sm:$0xff]  }
  0xb6   :  { %1786 = vmatpush1.bf16.msra.mxu0 %v3401_v50  ;;  %1869 = vmatprep.subr.bf16.mxu1 %v3412_v54  ;;  %v3498_v50 = vld [vmem:[#allocation5 + $0x32c] ss:$16 sps:$4 sm:$0xff]   ;;  %v3501_v54 = vld [vmem:[#allocation5 + $0x744] ss:$16 sps:$4 sm:$0xff]  }
  0xb7   :  { %1787 = vmatprep.subr.bf16.mxu0 %v3409_v53  ;;  %v3496_v53 = vld [vmem:[#allocation5 + $0x328] ss:$16 sps:$4 sm:$0xff]  }
  0xb9   :  { %1870 = vmatpush1.bf16.msra.mxu1 %v3410_v56  ;;  %v3499_v56 = vld [vmem:[#allocation5 + $0x740] ss:$16 sps:$4 sm:$0xff]  }
  0xba   :  { %1788 = vmatpush1.bf16.msra.mxu0 %v3407_v55  ;;  %1871 = vmatprep.subr.bf16.mxu1 %v3418_v58  ;;  %v3504_v55 = vld [vmem:[#allocation5 + $0x34c] ss:$16 sps:$4 sm:$0xff]   ;;  %v3507_v58 = vld [vmem:[#allocation5 + $0x764] ss:$16 sps:$4 sm:$0xff]  }
  0xbb   :  { %1789 = vmatprep.subr.bf16.mxu0 %v3415_v57  ;;  %v3502_v57 = vld [vmem:[#allocation5 + $0x348] ss:$16 sps:$4 sm:$0xff]  }
  0xbd   :  { %1872 = vmatpush1.bf16.msra.mxu1 %v3416_v60  ;;  %v3505_v60 = vld [vmem:[#allocation5 + $0x760] ss:$16 sps:$4 sm:$0xff]  }
  0xbe   :  { %1790 = vmatpush1.bf16.msra.mxu0 %v3413_v59  ;;  %1873 = vmatprep.subr.bf16.mxu1 %v3424_v62  ;;  %v3510_v59 = vld [vmem:[#allocation5 + $0x36c] ss:$16 sps:$4 sm:$0xff]   ;;  %v3513_v62 = vld [vmem:[#allocation5 + $0x784] ss:$16 sps:$4 sm:$0xff]  }
  0xbf   :  { %1791 = vmatprep.subr.bf16.mxu0 %v3421_v61  ;;  %v3508_v61 = vld [vmem:[#allocation5 + $0x368] ss:$16 sps:$4 sm:$0xff]  }
  0xc1   :  { %1874 = vmatpush1.bf16.msra.mxu1 %v3422_v0  ;;  %v3511_v0 = vld [vmem:[#allocation5 + $0x780] ss:$16 sps:$4 sm:$0xff]  }
  0xc2   :  { %1792 = vmatpush1.bf16.msra.mxu0 %v3419_v63  ;;  %1875 = vmatprep.subr.bf16.mxu1 %v3430_v2  ;;  %v3516_v63 = vld [vmem:[#allocation5 + $0x38c] ss:$16 sps:$4 sm:$0xff]   ;;  %v3519_v2 = vld [vmem:[#allocation5 + $0x7a4] ss:$16 sps:$4 sm:$0xff]  }
  0xc3   :  { %1793 = vmatprep.subr.bf16.mxu0 %v3427_v1  ;;  %v3514_v1 = vld [vmem:[#allocation5 + $0x388] ss:$16 sps:$4 sm:$0xff]  }
  0xc5   :  { %1876 = vmatpush1.bf16.msra.mxu1 %v3428_v4  ;;  %v3517_v4 = vld [vmem:[#allocation5 + $0x7a0] ss:$16 sps:$4 sm:$0xff]  }
  0xc6   :  { %1794 = vmatpush1.bf16.msra.mxu0 %v3425_v3  ;;  %1877 = vmatprep.subr.bf16.mxu1 %v3436_v8  ;;  %v3522_v3 = vld [vmem:[#allocation5 + $0x3ac] ss:$16 sps:$4 sm:$0xff]   ;;  %v3525_v8 = vld [vmem:[#allocation5 + $0x7c4] ss:$16 sps:$4 sm:$0xff]  }
  0xc7   :  { %1795 = vmatprep.subr.bf16.mxu0 %v3433_v5  ;;  %v3520_v5 = vld [vmem:[#allocation5 + $0x3a8] ss:$16 sps:$4 sm:$0xff]  }
  0xc9   :  { %1878 = vmatpush1.bf16.msra.mxu1 %v3434_v10  ;;  %v3523_v10 = vld [vmem:[#allocation5 + $0x7c0] ss:$16 sps:$4 sm:$0xff]  }
  0xca   :  { %1796 = vmatpush1.bf16.msra.mxu0 %v3431_v9  ;;  %1888 = vmatprep.subr.bf16.mxu1 %v3444_v12  ;;  %v3528_v9 = vld [vmem:[#allocation5 + $0x3cc] ss:$16 sps:$4 sm:$0xff]   ;;  %v3531_v12 = vld [vmem:[#allocation5 + $0x7e4] ss:$16 sps:$4 sm:$0xff]  }
  0xcb   :  { %1806 = vmatprep.subr.bf16.mxu0 %v3441_v11  ;;  %v3526_v11 = vld [vmem:[#allocation5 + $0x3c8] ss:$16 sps:$4 sm:$0xff]  }
  0xcc   :  { %1880 = vmatmul.mubr.bf16.vlgmr.msra.gmra.mrb[4].mxu1 %v3996_v6  ;;  %v3462_v6 = vld [vmem:[#allocation5 + $0x26c] ss:$16 sps:$4 sm:$0xff]  }
  0xcd   :  { %1798 = vmatmul.mubr.bf16.vlgmr.msra.gmra.mrb[0].mxu0 %v4012_v13  ;;  %1889 = vmatpush1.bf16.msra.mxu1 %v3442_v15  ;;  %v3529_v15 = vld [vmem:[#allocation5 + $0x7e0] ss:$16 sps:$4 sm:$0xff]  }
  0xce   :  { %1807 = vmatpush1.bf16.msra.mxu0 %v3439_v14  ;;  %1890 = vmatprep.subr.bf16.mxu1 %v3450_v17  ;;  %v3534_v14 = vld [vmem:[#allocation5 + $0x3ec] ss:$16 sps:$4 sm:$0xff]  }
  0xcf   :  { %1808 = vmatprep.subr.bf16.mxu0 %v3447_v16  ;;  %1838 = vmatprep.mubr.bf16.mxu0 %v4018_v19  ;;  %v3532_v16 = vld [vmem:[#allocation5 + $0x3e8] ss:$16 sps:$4 sm:$0xff]   ;;  %v3539_v17 = vld [vmem:[#allocation5 + $0x40c] ss:$16 sps:$4 sm:$0xff]  }
  0xd0   :  { %1920 = vmatprep.mubr.bf16.mxu1 %v3992_v51  ;;  %v3471_v51 = vld [vmem:[#allocation5 + $0x6a4] ss:$16 sps:$4 sm:$0xff]  }
  0xd1   :  { %1891 = vmatpush1.bf16.msra.mxu1 %v3448_v21  ;;  %v4026_v21 = vcombine.low %v4014_v18, %v4014_v18  ;;  %v3546_v18 = vld [vmem:[#allocation5 + $0x468] ss:$16 sps:$4 sm:$0xff]  }
  0xd2   :  { %1809 = vmatpush1.bf16.msra.mxu0 %v3445_v20  ;;  %1892 = vmatprep.subr.bf16.mxu1 %v3456_v23  ;;  %v3537_v20 = vld [vmem:[#allocation5 + $0x408] ss:$16 sps:$4 sm:$0xff]  }
  0xd3   :  { %1810 = vmatprep.subr.bf16.mxu0 %v3453_v22  ;;  %v3542_v22 = vld [vmem:[#allocation5 + $0x42c] ss:$16 sps:$4 sm:$0xff]   ;;  %v3540_v23 = vld [vmem:[#allocation5 + $0x428] ss:$16 sps:$4 sm:$0xff]  }
  0xd5   :  { %1893 = vmatpush1.bf16.msra.mxu1 %v3454_v25  ;;  %v3543_v25 = vld [vmem:[#allocation5 + $0x448] ss:$16 sps:$4 sm:$0xff]  }
  0xd6   :  { %1811 = vmatpush1.bf16.msra.mxu0 %v3451_v24  ;;  %1894 = vmatprep.subr.bf16.mxu1 %v3462_v6  ;;  %v3545_v24 = vld [vmem:[#allocation5 + $0x44c] ss:$16 sps:$4 sm:$0xff]  }
  0xd7   :  { %1812 = vmatprep.subr.bf16.mxu0 %v3459_v26  ;;  %v3548_v26 = vld [vmem:[#allocation5 + $0x46c] ss:$16 sps:$4 sm:$0xff]  }
  0xd8   :  { %v3551_v6 = vld [vmem:[#allocation5 + $0x48c] ss:$16 sps:$4 sm:$0xff]  }
  0xd9   :  { %1895 = vmatpush1.bf16.msra.mxu1 %v3460_v28  ;;  %v3554_v28 = vld [vmem:[#allocation5 + $0x4ac] ss:$16 sps:$4 sm:$0xff]  }
  0xda   :  { %1813 = vmatpush1.bf16.msra.mxu0 %v3457_v27  ;;  %1896 = vmatprep.subr.bf16.mxu1 %v3468_v30  ;;  %v3549_v27 = vld [vmem:[#allocation5 + $0x488] ss:$16 sps:$4 sm:$0xff]  }
  0xdb   :  { %1814 = vmatprep.subr.bf16.mxu0 %v3465_v29  ;;  %v3552_v29 = vld [vmem:[#allocation5 + $0x4a8] ss:$16 sps:$4 sm:$0xff]  }
  0xdc   :  { %v3555_v30 = vld [vmem:[#allocation5 + $0x4c8] ss:$16 sps:$4 sm:$0xff]  }
  0xdd   :  { %1897 = vmatpush1.bf16.msra.mxu1 %v3466_v32  ;;  %v3563_v32 = vld [vmem:[#allocation5 + $0x50c] ss:$16 sps:$4 sm:$0xff]  }
  0xde   :  { %1815 = vmatpush1.bf16.msra.mxu0 %v3463_v31  ;;  %1898 = vmatprep.subr.bf16.mxu1 %v3474_v33  ;;  %v3558_v31 = vld [vmem:[#allocation5 + $0x4e8] ss:$16 sps:$4 sm:$0xff]   ;;  %v3566_v33 = vld [vmem:[#allocation5 + $0x52c] ss:$16 sps:$4 sm:$0xff]  }
  0xdf   :  { %1816 = vmatprep.subr.bf16.mxu0 %v3471_v51  ;;  %v3561_v51 = vld [vmem:[#allocation5 + $0x508] ss:$16 sps:$4 sm:$0xff]  }
  0xe1   :  { %1899 = vmatpush1.bf16.msra.mxu1 %v3472_v36  ;;  %v3569_v36 = vld [vmem:[#allocation5 + $0x54c] ss:$16 sps:$4 sm:$0xff]  }
  0xe2   :  { %1817 = vmatpush1.bf16.msra.mxu0 %v3469_v35  ;;  %1900 = vmatprep.subr.bf16.mxu1 %v3480_v38  ;;  %v3564_v35 = vld [vmem:[#allocation5 + $0x528] ss:$16 sps:$4 sm:$0xff]   ;;  %v3572_v38 = vld [vmem:[#allocation5 + $0x56c] ss:$16 sps:$4 sm:$0xff]  }
  0xe3   :  { %1818 = vmatprep.subr.bf16.mxu0 %v3477_v37  ;;  %v3567_v37 = vld [vmem:[#allocation5 + $0x548] ss:$16 sps:$4 sm:$0xff]  }
  0xe5   :  { %1901 = vmatpush1.bf16.msra.mxu1 %v3478_v40  ;;  %v3575_v40 = vld [vmem:[#allocation5 + $0x58c] ss:$16 sps:$4 sm:$0xff]  }
  0xe6   :  { %1819 = vmatpush1.bf16.msra.mxu0 %v3475_v39  ;;  %1902 = vmatprep.subr.bf16.mxu1 %v3486_v42  ;;  %v3570_v39 = vld [vmem:[#allocation5 + $0x568] ss:$16 sps:$4 sm:$0xff]   ;;  %v3578_v42 = vld [vmem:[#allocation5 + $0x5ac] ss:$16 sps:$4 sm:$0xff]  }
  0xe7   :  { %1820 = vmatprep.subr.bf16.mxu0 %v3483_v41  ;;  %v3573_v41 = vld [vmem:[#allocation5 + $0x588] ss:$16 sps:$4 sm:$0xff]  }
  0xe9   :  { %1903 = vmatpush1.bf16.msra.mxu1 %v3484_v44  ;;  %v3581_v44 = vld [vmem:[#allocation5 + $0x5cc] ss:$16 sps:$4 sm:$0xff]  }
  0xea   :  { %1821 = vmatpush1.bf16.msra.mxu0 %v3481_v43  ;;  %1904 = vmatprep.subr.bf16.mxu1 %v3492_v46  ;;  %v3576_v43 = vld [vmem:[#allocation5 + $0x5a8] ss:$16 sps:$4 sm:$0xff]   ;;  %v3584_v46 = vld [vmem:[#allocation5 + $0x5ec] ss:$16 sps:$4 sm:$0xff]  }
  0xeb   :  { %1822 = vmatprep.subr.bf16.mxu0 %v3489_v45  ;;  %v3579_v45 = vld [vmem:[#allocation5 + $0x5c8] ss:$16 sps:$4 sm:$0xff]  }
  0xed   :  { %1905 = vmatpush1.bf16.msra.mxu1 %v3490_v48  ;;  %v3587_v48 = vld [vmem:[#allocation5 + $0x60c] ss:$16 sps:$4 sm:$0xff]  }
  0xee   :  { %1823 = vmatpush1.bf16.msra.mxu0 %v3487_v47  ;;  %1906 = vmatprep.subr.bf16.mxu1 %v3498_v50  ;;  %v3582_v47 = vld [vmem:[#allocation5 + $0x5e8] ss:$16 sps:$4 sm:$0xff]   ;;  %v3590_v50 = vld [vmem:[#allocation5 + $0x62c] ss:$16 sps:$4 sm:$0xff]  }
  0xef   :  { %1824 = vmatprep.subr.bf16.mxu0 %v3495_v49  ;;  %v3585_v49 = vld [vmem:[#allocation5 + $0x608] ss:$16 sps:$4 sm:$0xff]  }
  0xf1   :  { %1907 = vmatpush1.bf16.msra.mxu1 %v3496_v53  ;;  %v3593_v53 = vld [vmem:[#allocation5 + $0x64c] ss:$16 sps:$4 sm:$0xff]  }
  0xf2   :  { %1825 = vmatpush1.bf16.msra.mxu0 %v3493_v52  ;;  %1908 = vmatprep.subr.bf16.mxu1 %v3504_v55  ;;  %v3588_v52 = vld [vmem:[#allocation5 + $0x628] ss:$16 sps:$4 sm:$0xff]   ;;  %v3596_v55 = vld [vmem:[#allocation5 + $0x66c] ss:$16 sps:$4 sm:$0xff]  }
  0xf3   :  { %1826 = vmatprep.subr.bf16.mxu0 %v3501_v54  ;;  %v3591_v54 = vld [vmem:[#allocation5 + $0x648] ss:$16 sps:$4 sm:$0xff]  }
  0xf5   :  { %1909 = vmatpush1.bf16.msra.mxu1 %v3502_v57  ;;  %v3599_v57 = vld [vmem:[#allocation5 + $0x68c] ss:$16 sps:$4 sm:$0xff]  }
  0xf6   :  { %1827 = vmatpush1.bf16.msra.mxu0 %v3499_v56  ;;  %1910 = vmatprep.subr.bf16.mxu1 %v3510_v59  ;;  %v3594_v56 = vld [vmem:[#allocation5 + $0x668] ss:$16 sps:$4 sm:$0xff]   ;;  %v3602_v59 = vld [vmem:[#allocation5 + $0x6ac] ss:$16 sps:$4 sm:$0xff]  }
  0xf7   :  { %1828 = vmatprep.subr.bf16.mxu0 %v3507_v58  ;;  %v3597_v58 = vld [vmem:[#allocation5 + $0x688] ss:$16 sps:$4 sm:$0xff]  }
  0xf9   :  { %1911 = vmatpush1.bf16.msra.mxu1 %v3508_v61 }
  0xfa   :  { %1829 = vmatpush1.bf16.msra.mxu0 %v3505_v60  ;;  %1912 = vmatprep.subr.bf16.mxu1 %v3516_v63  ;;  %v3605_v60 = vld [vmem:[#allocation5 + $0x6cc] ss:$16 sps:$4 sm:$0xff]   ;;  %v3603_v63 = vld [vmem:[#allocation5 + $0x6c8] ss:$16 sps:$4 sm:$0xff]  }
  0xfb   :  { %1830 = vmatprep.subr.bf16.mxu0 %v3513_v62 }
  0xfd   :  { %1913 = vmatpush1.bf16.msra.mxu1 %v3514_v1  ;;  %v3608_v1 = vld [vmem:[#allocation5 + $0x6ec] ss:$16 sps:$4 sm:$0xff]  }
  0xfe   :  { %1831 = vmatpush1.bf16.msra.mxu0 %v3511_v0  ;;  %1914 = vmatprep.subr.bf16.mxu1 %v3522_v3  ;;  %v3611_v3 = vld [vmem:[#allocation5 + $0x70c] ss:$16 sps:$4 sm:$0xff]  }
  0xff   :  { %1832 = vmatprep.subr.bf16.mxu0 %v3519_v2  ;;  %v3606_v2 = vld [vmem:[#allocation5 + $0x6e8] ss:$16 sps:$4 sm:$0xff]  }
 0x101   :  { %1915 = vmatpush1.bf16.msra.mxu1 %v3520_v5  ;;  %v3614_v5 = vld [vmem:[#allocation5 + $0x72c] ss:$16 sps:$4 sm:$0xff]  }
 0x102   :  { %1833 = vmatpush1.bf16.msra.mxu0 %v3517_v4  ;;  %1916 = vmatprep.subr.bf16.mxu1 %v3528_v9  ;;  %v3609_v4 = vld [vmem:[#allocation5 + $0x708] ss:$16 sps:$4 sm:$0xff]   ;;  %v3617_v9 = vld [vmem:[#allocation5 + $0x74c] ss:$16 sps:$4 sm:$0xff]  }
 0x103   :  { %1834 = vmatprep.subr.bf16.mxu0 %v3525_v8  ;;  %v3612_v8 = vld [vmem:[#allocation5 + $0x728] ss:$16 sps:$4 sm:$0xff]  }
 0x105   :  { %1917 = vmatpush1.bf16.msra.mxu1 %v3526_v11  ;;  %v3620_v11 = vld [vmem:[#allocation5 + $0x76c] ss:$16 sps:$4 sm:$0xff]  }
 0x106   :  { %1835 = vmatpush1.bf16.msra.mxu0 %v3523_v10  ;;  %1918 = vmatprep.subr.bf16.mxu1 %v3534_v14  ;;  %v3615_v10 = vld [vmem:[#allocation5 + $0x748] ss:$16 sps:$4 sm:$0xff]   ;;  %v3623_v14 = vld [vmem:[#allocation5 + $0x78c] ss:$16 sps:$4 sm:$0xff]  }
 0x107   :  { %1836 = vmatprep.subr.bf16.mxu0 %v3531_v12  ;;  %v3618_v12 = vld [vmem:[#allocation5 + $0x768] ss:$16 sps:$4 sm:$0xff]  }
 0x109   :  { %1919 = vmatpush1.bf16.msra.mxu1 %v3532_v16  ;;  %v3626_v16 = vld [vmem:[#allocation5 + $0x7ac] ss:$16 sps:$4 sm:$0xff]  }
 0x10a   :  { %1837 = vmatpush1.bf16.msra.mxu0 %v3529_v15  ;;  %1929 = vmatprep.subr.bf16.mxu1 %v3539_v17  ;;  %v3621_v15 = vld [vmem:[#allocation5 + $0x788] ss:$16 sps:$4 sm:$0xff]  }
 0x10b   :  { %v3624_v17 = vld [vmem:[#allocation5 + $0x7a8] ss:$16 sps:$4 sm:$0xff]  }
 0x10c   :  { %1921 = vmatmul.mubr.bf16.vlgmr.msra.gmra.mrb[4].mxu1 %v3998_v7  ;;  %v3557_v7 = vld [vmem:[#allocation5 + $0x4cc] ss:$16 sps:$4 sm:$0xff]  }
 0x10d   :  { %1839 = vmatmul.mubr.bf16.vlgmr.msra.gmra.mrb[0].mxu0 %v4026_v21  ;;  %1930 = vmatpush1.bf16.msra.mxu1 %v3537_v20  ;;  %v3629_v20 = vld [vmem:[#allocation5 + $0x7cc] ss:$16 sps:$4 sm:$0xff]  }
 0x10e   :  { %1961 = vmatprep.mubr.bf16.mxu1 %v4007_v34  ;;  %1931 = vmatprep.subr.bf16.mxu1 %v3542_v22  ;;  %v3560_v34 = vld [vmem:[#allocation5 + $0x4ec] ss:$16 sps:$4 sm:$0xff]   ;;  %v3627_v22 = vld [vmem:[#allocation5 + $0x7c8] ss:$16 sps:$4 sm:$0xff]  }
 0x111   :  { %1932 = vmatpush1.bf16.msra.mxu1 %v3540_v23  ;;  %v3632_v23 = vld [vmem:[#allocation5 + $0x7ec] ss:$16 sps:$4 sm:$0xff]  }
 0x112   :  { %1933 = vmatprep.subr.bf16.mxu1 %v3545_v24  ;;  %v3630_v24 = vld [vmem:[#allocation5 + $0x7e8] ss:$16 sps:$4 sm:$0xff]  }
 0x115   :  { %1934 = vmatpush1.bf16.msra.mxu1 %v3543_v25  ;;  %v355_v25 = vlaneseq }
 0x116   :  { %1935 = vmatprep.subr.bf16.mxu1 %v3548_v26 }
 0x117   :  { %v356_v26 = vshrl.u32 %v355_v25, 7 }
 0x119   :  { %1936 = vmatpush1.bf16.msra.mxu1 %v3546_v18  ;;  %v4035_v18 = vsub.s32 0, %v356_v26 }
 0x11a   :  { %1937 = vmatprep.subr.bf16.mxu1 %v3551_v6  ;;  %v353_v6 = vld [vmem:[%s4100_s2] sm:$0xf] }
 0x11d   :  { %1938 = vmatpush1.bf16.msra.mxu1 %v3549_v27  ;;  %v4040_v27 = vsub.s32 1, %v356_v26 }
 0x11e   :  { %1939 = vmatprep.subr.bf16.mxu1 %v3554_v28  ;;  %v358_v28 = vrot.slane %v353_v6, %v4035_v18 }
 0x121   :  { %1940 = vmatpush1.bf16.msra.mxu1 %v3552_v29  ;;  %v362_v29 = vrot.slane %v353_v6, %v4040_v27 }
 0x122   :  { %1941 = vmatprep.subr.bf16.mxu1 %v3557_v7 }
 0x125   :  { %1942 = vmatpush1.bf16.msra.mxu1 %v3555_v30 }
 0x126   :  { %1943 = vmatprep.subr.bf16.mxu1 %v3560_v34 }
 0x129   :  { %1944 = vmatpush1.bf16.msra.mxu1 %v3558_v31 }
 0x12a   :  { %1945 = vmatprep.subr.bf16.mxu1 %v3563_v32 }
 0x12d   :  { %1946 = vmatpush1.bf16.msra.mxu1 %v3561_v51 }
 0x12e   :  { %1947 = vmatprep.subr.bf16.mxu1 %v3566_v33 }
 0x131   :  { %1948 = vmatpush1.bf16.msra.mxu1 %v3564_v35  ;;  %v4044_v35 = vsub.s32 2, %v356_v26 }
 0x132   :  { %1949 = vmatprep.subr.bf16.mxu1 %v3569_v36  ;;  %v4046_v36 = vsub.s32 3, %v356_v26  ;;  %v3666_v26 = vld [vmem:[#allocation7 + $0xb0] ss:$8 sps:$4 sm:$0xff]  }
 0x135   :  { %1950 = vmatpush1.bf16.msra.mxu1 %v3567_v37  ;;  %v366_v37 = vrot.slane %v353_v6, %v4044_v35 }
 0x136   :  { %1951 = vmatprep.subr.bf16.mxu1 %v3572_v38  ;;  %v370_v38 = vrot.slane %v353_v6, %v4046_v36  ;;  %v3671_v6 = vld [vmem:[#allocation7 + $0xc4] ss:$8 sps:$4 sm:$0xff]  }
 0x139   :  { %1952 = vmatpush1.bf16.msra.mxu1 %v3570_v39 }
 0x13a   :  { %1953 = vmatprep.subr.bf16.mxu1 %v3575_v40 }
 0x13d   :  { %1954 = vmatpush1.bf16.msra.mxu1 %v3573_v41 }
 0x13e   :  { %1955 = vmatprep.subr.bf16.mxu1 %v3578_v42 }
 0x141   :  { %1956 = vmatpush1.bf16.msra.mxu1 %v3576_v43 }
 0x142   :  { %1957 = vmatprep.subr.bf16.mxu1 %v3581_v44 }
 0x145   :  { %1958 = vmatpush1.bf16.msra.mxu1 %v3579_v45 }
 0x146   :  { %1959 = vmatprep.subr.bf16.mxu1 %v3584_v46 }
 0x149   :  { %1960 = vmatpush1.bf16.msra.mxu1 %v3582_v47 }
 0x14a   :  { %1970 = vmatprep.subr.bf16.mxu1 %v3587_v48  ;;  %v3633_v48 = vld [vmem:[#allocation7] ss:$8 sps:$4 sm:$0xff]  }
 0x14c   :  { %1962 = vmatmul.mubr.bf16.vlgmr.msra.gmra.mrb[4].mxu1 %v4012_v13  ;;  %v3600_v13 = vld [vmem:[#allocation5 + $0x6a8] ss:$16 sps:$4 sm:$0xff]  }
 0x14d   :  { %1971 = vmatpush1.bf16.msra.mxu1 %v3585_v49  ;;  %2002 = vmatprep.mubr.bf16.mxu1 %v4018_v19  ;;  %v3635_v49 = vld [vmem:[#allocation7 + $0x4] ss:$8 sps:$4 sm:$0xff]  }
 0x14e   :  { %1972 = vmatprep.subr.bf16.mxu1 %v3590_v50  ;;  %v3638_v50 = vld [vmem:[#allocation7 + $0x14] ss:$8 sps:$4 sm:$0xff]   ;;  %2494 = vmatprep.subr.bf16.mxu0 %v3635_v49 }
 0x14f   :  { %2495 = vmatpush1.bf16.msra.mxu0 %v3633_v48 }
 0x150   :  { %2496 = vmatprep.subr.bf16.mxu0 %v3638_v50 }
 0x151   :  { %1973 = vmatpush1.bf16.msra.mxu1 %v3588_v52  ;;  %v3636_v52 = vld [vmem:[#allocation7 + $0x10] ss:$8 sps:$4 sm:$0xff]  }
 0x152   :  { %1974 = vmatprep.subr.bf16.mxu1 %v3593_v53  ;;  %v3641_v53 = vld [vmem:[#allocation7 + $0x24] ss:$8 sps:$4 sm:$0xff]  }
 0x153   :  { %2497 = vmatpush1.bf16.msra.mxu0 %v3636_v52 }
 0x154   :  { %2498 = vmatprep.subr.bf16.mxu0 %v3641_v53 }
 0x155   :  { %1975 = vmatpush1.bf16.msra.mxu1 %v3591_v54  ;;  %v3639_v54 = vld [vmem:[#allocation7 + $0x20] ss:$8 sps:$4 sm:$0xff]  }
 0x156   :  { %1976 = vmatprep.subr.bf16.mxu1 %v3596_v55  ;;  %v3644_v55 = vld [vmem:[#allocation7 + $0x34] ss:$8 sps:$4 sm:$0xff]  }
 0x157   :  { %2499 = vmatpush1.bf16.msra.mxu0 %v3639_v54 }
 0x158   :  { %2500 = vmatprep.subr.bf16.mxu0 %v3644_v55 }
 0x159   :  { %1977 = vmatpush1.bf16.msra.mxu1 %v3594_v56  ;;  %v3642_v56 = vld [vmem:[#allocation7 + $0x30] ss:$8 sps:$4 sm:$0xff]  }
 0x15a   :  { %1978 = vmatprep.subr.bf16.mxu1 %v3599_v57  ;;  %v3647_v57 = vld [vmem:[#allocation7 + $0x44] ss:$8 sps:$4 sm:$0xff]  }
 0x15b   :  { %2501 = vmatpush1.bf16.msra.mxu0 %v3642_v56 }
 0x15c   :  { %2502 = vmatprep.subr.bf16.mxu0 %v3647_v57 }
 0x15d   :  { %1979 = vmatpush1.bf16.msra.mxu1 %v3597_v58  ;;  %v3645_v58 = vld [vmem:[#allocation7 + $0x40] ss:$8 sps:$4 sm:$0xff]  }
 0x15e   :  { %1980 = vmatprep.subr.bf16.mxu1 %v3602_v59  ;;  %v3650_v59 = vld [vmem:[#allocation7 + $0x54] ss:$8 sps:$4 sm:$0xff]  }
 0x15f   :  { %v1717_v61 = vpop.f32.mrb[0].mxu1  ;;  %2503 = vmatpush1.bf16.msra.mxu0 %v3645_v58 }
 0x160   :  { %v1719_v19 = vpop.f32.mrb[1].mxu1  ;;  %v1718_v7 = vadd.f32 %v1717_v61, %v358_v28  ;;  %2504 = vmatprep.subr.bf16.mxu0 %v3650_v59  ;;  %v3651_v61 = vld [vmem:[#allocation7 + $0x60] ss:$8 sps:$4 sm:$0xff]  }
 0x161   :  { %v1721_v62 = vpop.f32.mrb[2].mxu1  ;;  %1981 = vmatpush1.bf16.msra.mxu1 %v3600_v13  ;;  %v1720_v30 = vadd.f32 %v1719_v19, %v362_v29  ;;  %v3648_v13 = vld [vmem:[#allocation7 + $0x50] ss:$8 sps:$4 sm:$0xff]   ;;  %v3656_v19 = vld [vmem:[#allocation7 + $0x74] ss:$8 sps:$4 sm:$0xff]  }
 0x162   :  { %v1722_v0 = vpop.f32.mrb[3].mxu1  ;;  %1982 = vmatprep.subr.bf16.mxu1 %v3605_v60  ;;  %v3653_v60 = vld [vmem:[#allocation7 + $0x64] ss:$8 sps:$4 sm:$0xff]   ;;  %v3654_v62 = vld [vmem:[#allocation7 + $0x70] ss:$8 sps:$4 sm:$0xff]  }
 0x163   :  { %2505 = vmatpush1.bf16.msra.mxu0 %v3648_v13  ;;  %v3657_v0 = vld [vmem:[#allocation7 + $0x80] ss:$8 sps:$4 sm:$0xff]   ;;  %v3674_v29 = vld [vmem:[#allocation7 + $0xd4] ss:$8 sps:$4 sm:$0xff]  }
 0x164   :  { %2506 = vmatprep.subr.bf16.mxu0 %v3653_v60  ;;  %v3669_v28 = vld [vmem:[#allocation7 + $0xc0] ss:$8 sps:$4 sm:$0xff]  }
 0x165   :  { %1983 = vmatpush1.bf16.msra.mxu1 %v3603_v63  ;;  %v3659_v63 = vld [vmem:[#allocation7 + $0x84] ss:$8 sps:$4 sm:$0xff]  }
 0x166   :  { %1984 = vmatprep.subr.bf16.mxu1 %v3608_v1  ;;  %v3662_v1 = vld [vmem:[#allocation7 + $0x94] ss:$8 sps:$4 sm:$0xff]  }
 0x167   :  { %2507 = vmatpush1.bf16.msra.mxu0 %v3651_v61 }
 0x168   :  { %2508 = vmatprep.subr.bf16.mxu0 %v3656_v19 }
 0x169   :  { %1985 = vmatpush1.bf16.msra.mxu1 %v3606_v2  ;;  %v3660_v2 = vld [vmem:[#allocation7 + $0x90] ss:$8 sps:$4 sm:$0xff]  }
 0x16a   :  { %1986 = vmatprep.subr.bf16.mxu1 %v3611_v3 }
 0x16b   :  { %2509 = vmatpush1.bf16.msra.mxu0 %v3654_v62 }
 0x16c   :  { %2510 = vmatprep.subr.bf16.mxu0 %v3659_v63 }
 0x16d   :  { %1987 = vmatpush1.bf16.msra.mxu1 %v3609_v4 }
 0x16e   :  { %1988 = vmatprep.subr.bf16.mxu1 %v3614_v5 }
 0x16f   :  { %2511 = vmatpush1.bf16.msra.mxu0 %v3657_v0 }
 0x170   :  { %2512 = vmatprep.subr.bf16.mxu0 %v3662_v1 }
 0x171   :  { %1989 = vmatpush1.bf16.msra.mxu1 %v3612_v8 }
 0x172   :  { %1990 = vmatprep.subr.bf16.mxu1 %v3617_v9 }
 0x173   :  { %2513 = vmatpush1.bf16.msra.mxu0 %v3660_v2  ;;  %v3684_v2 = vld [vmem:[#allocation7 + $0x110] ss:$8 sps:$4 sm:$0xff]  }
 0x175   :  { %1991 = vmatpush1.bf16.msra.mxu1 %v3615_v10 }
 0x176   :  { %1992 = vmatprep.subr.bf16.mxu1 %v3620_v11 }
 0x179   :  { %1993 = vmatpush1.bf16.msra.mxu1 %v3618_v12 }
 0x17a   :  { %1994 = vmatprep.subr.bf16.mxu1 %v3623_v14 }
 0x17d   :  { %1995 = vmatpush1.bf16.msra.mxu1 %v3621_v15 }
 0x17e   :  { %1996 = vmatprep.subr.bf16.mxu1 %v3626_v16 }
 0x181   :  { %1997 = vmatpush1.bf16.msra.mxu1 %v3624_v17 }
 0x182   :  { %1998 = vmatprep.subr.bf16.mxu1 %v3629_v20 }
 0x185   :  { %1999 = vmatpush1.bf16.msra.mxu1 %v3627_v22  ;;  %v3665_v22 = vld [vmem:[#allocation7 + $0xa4] ss:$8 sps:$4 sm:$0xff]  }
 0x186   :  { %2000 = vmatprep.subr.bf16.mxu1 %v3632_v23  ;;  %v3663_v23 = vld [vmem:[#allocation7 + $0xa0] ss:$8 sps:$4 sm:$0xff]   ;;  %2514 = vmatprep.subr.bf16.mxu0 %v3665_v22 }
 0x187   :  { %2515 = vmatpush1.bf16.msra.mxu0 %v3663_v23  ;;  %v3705_v22 = vld [vmem:[#allocation7 + $0x180] ss:$8 sps:$4 sm:$0xff]   ;;  %v3710_v23 = vld [vmem:[#allocation7 + $0x194] ss:$8 sps:$4 sm:$0xff]  }
 0x189   :  { %2001 = vmatpush1.bf16.msra.mxu1 %v3630_v24  ;;  %v3668_v24 = vld [vmem:[#allocation7 + $0xb4] ss:$8 sps:$4 sm:$0xff]  }
 0x18a   :  { %2516 = vmatprep.subr.bf16.mxu0 %v3668_v24  ;;  %v3708_v24 = vld [vmem:[#allocation7 + $0x190] ss:$8 sps:$4 sm:$0xff]  }
 0x18b   :  { %2517 = vmatpush1.bf16.msra.mxu0 %v3666_v26  ;;  %v3713_v26 = vld [vmem:[#allocation7 + $0x1a4] ss:$8 sps:$4 sm:$0xff]  }
 0x18c   :  { %2003 = vmatmul.mubr.bf16.vlgmr.msra.gmra.mrb[4].mxu1 %v4026_v21  ;;  %2518 = vmatprep.subr.bf16.mxu0 %v3671_v6  ;;  %v3711_v6 = vld [vmem:[#allocation7 + $0x1a0] ss:$8 sps:$4 sm:$0xff]  }
 0x18f   :  { %2519 = vmatpush1.bf16.msra.mxu0 %v3669_v28  ;;  %v3716_v28 = vld [vmem:[#allocation7 + $0x1b4] ss:$8 sps:$4 sm:$0xff]  }
 0x190   :  { %2520 = vmatprep.subr.bf16.mxu0 %v3674_v29  ;;  %v3714_v29 = vld [vmem:[#allocation7 + $0x1b0] ss:$8 sps:$4 sm:$0xff]  }
 0x1e0   :  { %v1840_v34 = vpop.f32.mrb[0].mxu0 }
 0x1e1   :  { %v3199_v31 = vadd.f32 %v1840_v34, %v1718_v7  ;;  %v1842_v21 = vpop.f32.mrb[1].mxu0  ;;  %v3672_v7 = vld [vmem:[#allocation7 + $0xd0] ss:$8 sps:$4 sm:$0xff]   ;;  %v3675_v34 = vld [vmem:[#allocation7 + $0xe0] ss:$8 sps:$4 sm:$0xff]  }
 0x1e2   :  { %v3201_v32 = vadd.f32 %v1842_v21, %v1720_v30  ;;  %v1844_v51 = vpop.f32.mrb[2].mxu0  ;;  %v3677_v30 = vld [vmem:[#allocation7 + $0xe4] ss:$8 sps:$4 sm:$0xff]   ;;  %2521 = vmatpush1.bf16.msra.mxu0 %v3672_v7  ;;  %v3678_v21 = vld [vmem:[#allocation7 + $0xf0] ss:$8 sps:$4 sm:$0xff]  }
 0x1e3   :  { %v1845_v33 = vpop.f32.mrb[3].mxu0  ;;  %2522 = vmatprep.subr.bf16.mxu0 %v3677_v30  ;;  %v3719_v7 = vld [vmem:[#allocation7 + $0x1c4] ss:$8 sps:$4 sm:$0xff]   ;;  %v3717_v30 = vld [vmem:[#allocation7 + $0x1c0] ss:$8 sps:$4 sm:$0xff]  }
 0x1e4   :  { %v2013_v40 = vadd.f32 %v3201_v32, %v3199_v31 }
 0x1e6   :  { %2523 = vmatpush1.bf16.msra.mxu0 %v3675_v34  ;;  %v3722_v34 = vld [vmem:[#allocation7 + $0x1d4] ss:$8 sps:$4 sm:$0xff]  }
 0x25f   :  { %v2004_v39 = vpop.f32.mrb[4].mxu1 }
 0x260   :  { %v3202_v41 = vadd.f32 %v2004_v39, %v366_v37  ;;  %v2006_v42 = vpop.f32.mrb[5].mxu1  ;;  %v2012_v39 = vld [vmem:[%s4102_s4] sm:$0xf] }
 0x261   :  { %v3203_v43 = vadd.f32 %v2006_v42, %v370_v38  ;;  %v2008_v44 = vpop.f32.mrb[6].mxu1  ;;  %v2011_v38 = vld [vmem:[%s4101_s3] sm:$0xf]  ;;  %v2077_v48 = vrot.slane %v2012_v39, %v4044_v35 }
 0x262   :  { %v2009_v45 = vpop.f32.mrb[7].mxu1  ;;  %v2014_v46 = vadd.f32 %v3202_v41, %v2013_v40  ;;  %v2052_v40 = vrot.slane %v2011_v38, %v4044_v35  ;;  %v2044_v42 = vrot.slane %v2011_v38, %v4035_v18  ;;  %v3686_v35 = vld [vmem:[#allocation7 + $0x114] ss:$8 sps:$4 sm:$0xff]  }
 0x263   :  { %v2073_v45 = vrot.slane %v2012_v39, %v4040_v27 }
 0x264   :  { %v2015_v47 = vadd.f32 %v3203_v43, %v2014_v46  ;;  %v2069_v46 = vrot.slane %v2012_v39, %v4035_v18 }
 0x266   :  { %2016 = vadd.xlane.f32.xlu0 %v2015_v47  ;;  %v2081_v47 = vrot.slane %v2012_v39, %v4046_v36  ;;  %v2162_v39 = vld [vmem:[%s4104_s6] sm:$0x3] }
 0x2f3   :  { %v2017_v3 = vpop.xlane.xlu0 %2016 }
 0x2f4   :  { %v2019_v4 = vmul.f32 0.001953125, %v2017_v3  ;;  %v3689_v3 = vld [vmem:[#allocation7 + $0x124] ss:$8 sps:$4 sm:$0xff]  }
 0x2f6   :  { %v2020_v5 = vsub.f32 %v3199_v31, %v2019_v4  ;;  %v2021_v8 = vsub.f32 %v3201_v32, %v2019_v4  ;;  %v2022_v9 = vsub.f32 %v3202_v41, %v2019_v4  ;;  %v2023_v10 = vsub.f32 %v3203_v43, %v2019_v4  ;;  %v3680_v31 = vld [vmem:[#allocation7 + $0xf4] ss:$8 sps:$4 sm:$0xff]   ;;  %v3683_v32 = vld [vmem:[#allocation7 + $0x104] ss:$8 sps:$4 sm:$0xff]   ;;  %v3687_v4 = vld [vmem:[#allocation7 + $0x120] ss:$8 sps:$4 sm:$0xff]  }
 0x2f7   :  { %2524 = vmatprep.subr.bf16.mxu0 %v3680_v31  ;;  %v2048_v41 = vrot.slane %v2011_v38, %v4040_v27  ;;  %v2056_v43 = vrot.slane %v2011_v38, %v4046_v36  ;;  %v3681_v36 = vld [vmem:[#allocation7 + $0x100] ss:$8 sps:$4 sm:$0xff]   ;;  %v3720_v31 = vld [vmem:[#allocation7 + $0x1d0] ss:$8 sps:$4 sm:$0xff]  }
 0x2f8   :  { %v2024_v11 = vmul.f32 %v2020_v5, %v2020_v5  ;;  %v2025_v12 = vmul.f32 %v2021_v8, %v2021_v8  ;;  %v2026_v14 = vmul.f32 %v2022_v9, %v2022_v9  ;;  %v2027_v16 = vmul.f32 %v2023_v10, %v2023_v10  ;;  %2525 = vmatpush1.bf16.msra.mxu0 %v3678_v21  ;;  %v3725_v21 = vld [vmem:[#allocation7 + $0x1e4] ss:$8 sps:$4 sm:$0xff]  }
 0x2f9   :  { %2535 = vmatprep.subr.bf16.mxu0 %v3683_v32  ;;  %v3723_v32 = vld [vmem:[#allocation7 + $0x1e0] ss:$8 sps:$4 sm:$0xff]  }
 0x2fa   :  { %v2028_v15 = vadd.f32 %v2025_v12, %v2024_v11  ;;  %v3698_v11 = vld [vmem:[#allocation7 + $0x154] ss:$8 sps:$4 sm:$0xff]   ;;  %v3696_v12 = vld [vmem:[#allocation7 + $0x150] ss:$8 sps:$4 sm:$0xff]  }
 0x2fc   :  { %v2029_v17 = vadd.f32 %v2028_v15, %v2026_v14  ;;  %v3701_v14 = vld [vmem:[#allocation7 + $0x164] ss:$8 sps:$4 sm:$0xff]   ;;  %v3699_v15 = vld [vmem:[#allocation7 + $0x160] ss:$8 sps:$4 sm:$0xff]  }
 0x2fe   :  { %v2030_v20 = vadd.f32 %v2029_v17, %v2027_v16  ;;  %v3704_v16 = vld [vmem:[#allocation7 + $0x174] ss:$8 sps:$4 sm:$0xff]   ;;  %v3702_v17 = vld [vmem:[#allocation7 + $0x170] ss:$8 sps:$4 sm:$0xff]  }
 0x300   :  { %2031 = vadd.xlane.f32.xlu0 %v2030_v20  ;;  %v3707_v20 = vld [vmem:[#allocation7 + $0x184] ss:$8 sps:$4 sm:$0xff]  }
 0x38d   :  { %v2032_v51 = vpop.xlane.xlu0 %2031 }
 0x38e   :  { %v2033_v33 = vmul.f32 0.001953125, %v2032_v51  ;;  %v3728_v51 = vld [vmem:[#allocation7 + $0x1f4] ss:$8 sps:$4 sm:$0xff]  }
 0x390   :  { %v2034_v37 = vadd.f32 1e-05, %v2033_v33  ;;  %v3726_v33 = vld [vmem:[#allocation7 + $0x1f0] ss:$8 sps:$4 sm:$0xff]  }
 0x392   :  { %3745 = vrsqrt.f32 %v2034_v37 }
 0x39c   :  { %v3746_v44 = vpop.eup %3745 }
 0x39d   :  { %v2037_v49 = vmul.f32 %v3746_v44, %v2021_v8  ;;  %v2036_v50 = vmul.f32 %v3746_v44, %v2020_v5  ;;  %v2039_v52 = vmul.f32 %v3746_v44, %v2023_v10  ;;  %v2038_v53 = vmul.f32 %v3746_v44, %v2022_v9  ;;  %v3692_v5 = vld [vmem:[#allocation7 + $0x134] ss:$8 sps:$4 sm:$0xff]   ;;  %v3690_v8 = vld [vmem:[#allocation7 + $0x130] ss:$8 sps:$4 sm:$0xff]   ;;  %v3695_v9 = vld [vmem:[#allocation7 + $0x144] ss:$8 sps:$4 sm:$0xff]  }
 0x39e   :  { %v3693_v10 = vld [vmem:[#allocation7 + $0x140] ss:$8 sps:$4 sm:$0xff]  }
 0x39f   :  { %v2062_v54 = vmul.f32 %v2048_v41, %v2037_v49  ;;  %v2061_v55 = vmul.f32 %v2044_v42, %v2036_v50  ;;  %v2064_v56 = vmul.f32 %v2056_v43, %v2039_v52  ;;  %v2063_v57 = vmul.f32 %v2052_v40, %v2038_v53  ;;  %v3729_v49 = vld [vmem:[#allocation8 + $0x40] sm:$0xff]   ;;  %v3731_v52 = vld [vmem:[#allocation8 + $0x48] sm:$0xff]  }
 0x3a0   :  { %v2167_v40 = vrot.slane %v2162_v39, %v4035_v18  ;;  %v2171_v41 = vrot.slane %v2162_v39, %v4040_v27  ;;  %v3730_v50 = vld [vmem:[#allocation8] sm:$0xff]   ;;  %3176 = vmatprep.subr.bf16.mxu1 %v3729_v49  ;;  %v3732_v53 = vld [vmem:[#allocation8 + $0x8] sm:$0xff]  }
 0x3a1   :  { %v2087_v58 = vadd.f32 %v2073_v45, %v2062_v54  ;;  %v2086_v59 = vadd.f32 %v2069_v46, %v2061_v55  ;;  %v2089_v13 = vadd.f32 %v2081_v47, %v2064_v56  ;;  %v4064_v60 = vadd.f32 %v2077_v48, %v2063_v57  ;;  %3177 = vmatpush3.bf16.msra.mxu1 %v3730_v50 }
 0x3a2   :  { %3178 = vmatprep.subr.bf16.mxu1 %v3731_v52 }
 0x3a3   :  { %v2091_v61 = vmax.f32 %v2087_v58, 0.0  ;;  %v2090_v19 = vmax.f32 %v2086_v59, 0.0  ;;  %v2093_v62 = vmax.f32 %v2089_v13, 0.0  ;;  %v2092_v37 = vmax.f32 %v4064_v60, 0.0  ;;  %v3733_v60 = vld [vmem:[#allocation8 + $0x50] sm:$0xff]  }
 0x3a5   :  { %v2095_v63 = vpack.c.bf16 %v2091_v61, %v2091_v61  ;;  %v2094_v0 = vpack.c.bf16 %v2090_v19, %v2090_v19  ;;  %v2097_v1 = vpack.c.bf16 %v2093_v62, %v2093_v62  ;;  %v2096_v38 = vpack.c.bf16 %v2092_v37, %v2092_v37  ;;  %3179 = vmatpush3.bf16.msra.mxu1 %v3732_v53  ;;  %v3734_v61 = vld [vmem:[#allocation8 + $0x10] sm:$0xff]   ;;  %v3735_v19 = vld [vmem:[#allocation8 + $0x58] sm:$0xff]  }
 0x3a6   :  { %3180 = vmatprep.subr.bf16.mxu1 %v3733_v60  ;;  %v3736_v62 = vld [vmem:[#allocation8 + $0x18] sm:$0xff]  }
 0x3a7   :  { %2526 = vmatprep.mubr.bf16.mxu0 %v2095_v63  ;;  %v3737_v63 = vld [vmem:[#allocation8 + $0x60] sm:$0xff]  }
 0x3a8   :  { %2527 = vmatmul.mubr.bf16.vlgmr.msra.gmra.mrb[4].mxu0 %v2094_v0  ;;  %v3739_v0 = vld [vmem:[#allocation8 + $0x68] sm:$0xff]  }
 0x3a9   :  { %2536 = vmatpush1.bf16.msra.mxu0 %v3681_v36  ;;  %2567 = vmatprep.mubr.bf16.mxu0 %v2097_v1  ;;  %v3738_v36 = vld [vmem:[#allocation8 + $0x20] sm:$0xff]   ;;  %v3741_v1 = vld [vmem:[#allocation8 + $0x70] sm:$0xff]  }
 0x3aa   :  { %2537 = vmatprep.subr.bf16.mxu0 %v3686_v35  ;;  %3181 = vmatpush3.bf16.msra.mxu1 %v3734_v61  ;;  %v3740_v35 = vld [vmem:[#allocation8 + $0x28] sm:$0xff]  }
 0x3ab   :  { %3182 = vmatprep.subr.bf16.mxu1 %v3735_v19 }
 0x3ad   :  { %2538 = vmatpush1.bf16.msra.mxu0 %v3684_v2  ;;  %v3742_v2 = vld [vmem:[#allocation8 + $0x30] sm:$0xff]  }
 0x3ae   :  { %2539 = vmatprep.subr.bf16.mxu0 %v3689_v3  ;;  %3183 = vmatpush3.bf16.msra.mxu1 %v3736_v62  ;;  %v3743_v3 = vld [vmem:[#allocation8 + $0x78] sm:$0xff]  }
 0x3af   :  { %3184 = vmatprep.subr.bf16.mxu1 %v3737_v63 }
 0x3b1   :  { %2540 = vmatpush1.bf16.msra.mxu0 %v3687_v4  ;;  %v3744_v4 = vld [vmem:[#allocation8 + $0x38] sm:$0xff]  }
 0x3b2   :  { %2541 = vmatprep.subr.bf16.mxu0 %v3692_v5  ;;  %3185 = vmatpush3.bf16.msra.mxu1 %v3738_v36 }
 0x3b3   :  { %3186 = vmatprep.subr.bf16.mxu1 %v3739_v0 }
 0x3b5   :  { %2542 = vmatpush1.bf16.msra.mxu0 %v3690_v8 }
 0x3b6   :  { %2543 = vmatprep.subr.bf16.mxu0 %v3695_v9  ;;  %3187 = vmatpush3.bf16.msra.mxu1 %v3740_v35 }
 0x3b7   :  { %3188 = vmatprep.subr.bf16.mxu1 %v3741_v1 }
 0x3b9   :  { %2544 = vmatpush1.bf16.msra.mxu0 %v3693_v10  ;;  %v2576_v10 = vld [vmem:[%s4105_s7] sm:$0x3] }
 0x3ba   :  { %2545 = vmatprep.subr.bf16.mxu0 %v3698_v11  ;;  %3189 = vmatpush3.bf16.msra.mxu1 %v3742_v2  ;;  %v2577_v11 = vld [vmem:[%s4106_s8] sm:$0x3] }
 0x3bb   :  { %3190 = vmatprep.subr.bf16.mxu1 %v3743_v3 }
 0x3bd   :  { %2546 = vmatpush1.bf16.msra.mxu0 %v3696_v12  ;;  %v2599_v12 = vrot.slane %v2576_v10, %v4035_v18 }
 0x3be   :  { %2547 = vmatprep.subr.bf16.mxu0 %v3701_v14  ;;  %3191 = vmatpush3.bf16.msra.mxu1 %v3744_v4  ;;  %v2603_v14 = vrot.slane %v2576_v10, %v4040_v27 }
 0x3c1   :  { %2548 = vmatpush1.bf16.msra.mxu0 %v3699_v15 }
 0x3c2   :  { %2549 = vmatprep.subr.bf16.mxu0 %v3704_v16 }
 0x3c5   :  { %2550 = vmatpush1.bf16.msra.mxu0 %v3702_v17  ;;  %v2612_v17 = vrot.slane %v2577_v11, %v4035_v18  ;;  %v3159_v18 = vld [vmem:[%s4108_s10] ss:$0 sm:$0xff]  ;;  %s3841_s10 = scalar_lea.vmem %s2821_s19, 128 }
 0x3c6   :  { %2551 = vmatprep.subr.bf16.mxu0 %v3707_v20  ;;  %v2616_v20 = vrot.slane %v2577_v11, %v4040_v27  ;;  %p3842_p4 = scmp.ne.s32.totalorder %s2821_s19, %s3841_s10  ;;  %p3847_p6 = scmp.lt.s32.totalorder %s3841_s10, %s3841_s10 }
 0x3c8   :  { %p3848_p7 = por %p3847_p6, %p3846_p5 }
 0x3c9   :  { %2552 = vmatpush1.bf16.msra.mxu0 %v3705_v22 }
 0x3ca   :  { %2553 = vmatprep.subr.bf16.mxu0 %v3710_v23  ;;  %p3849_p8 = pnand %p3848_p7, %p3842_p4 }
 0x3cd   :  { %2554 = vmatpush1.bf16.msra.mxu0 %v3708_v24 }
 0x3ce   :  { %2555 = vmatprep.subr.bf16.mxu0 %v3713_v26 }
 0x3d1   :  { %2556 = vmatpush1.bf16.msra.mxu0 %v3711_v6 }
 0x3d2   :  { %2557 = vmatprep.subr.bf16.mxu0 %v3716_v28 }
 0x3d5   :  { %2558 = vmatpush1.bf16.msra.mxu0 %v3714_v29 }
 0x3d6   :  { %2559 = vmatprep.subr.bf16.mxu0 %v3719_v7 }
 0x3d9   :  { %2560 = vmatpush1.bf16.msra.mxu0 %v3717_v30 }
 0x3da   :  { %2561 = vmatprep.subr.bf16.mxu0 %v3722_v34  ;;  %v2801_v34 = vand.u32 127, %v355_v25 }
 0x3dc   :  { %vm2802_vm0 = vcmp.lt.s32.totalorder %v2801_v34, 16 }
 0x3dd   :  { %2562 = vmatpush1.bf16.msra.mxu0 %v3720_v31 }
 0x3de   :  { %2563 = vmatprep.subr.bf16.mxu0 %v3725_v21 }
 0x3e1   :  { %2564 = vmatpush1.bf16.msra.mxu0 %v3723_v32 }
 0x3e2   :  { %2565 = vmatprep.subr.bf16.mxu0 %v3728_v51 }
 0x3e5   :  { %2566 = vmatpush1.bf16.msra.mxu0 %v3726_v33 }
 0x3e8   :  { %2568 = vmatmul.mubr.bf16.vlgmr.msra.gmra.mrb[4].mxu0 %v2096_v38 }
 0x4bb   :  { %v2569_v42 = vpop.f32.mrb[4].mxu0 }
 0x4bc   :  { %v3204_v43 = vadd.f32 %v2569_v42, %v2167_v40  ;;  %v2571_v44 = vpop.f32.mrb[5].mxu0 }
 0x4bd   :  { %v3205_v45 = vadd.f32 %v2571_v44, %v2171_v41  ;;  %v2573_v46 = vpop.f32.mrb[6].mxu0 }
 0x4be   :  { %v2574_v47 = vpop.f32.mrb[7].mxu0 }
 0x4bf   :  { %v2578_v48 = vadd.f32 %v3205_v45, %v3204_v43 }
 0x4c1   :  { %2579 = vadd.xlane.f32.xlu1 %v2578_v48 }
 0x54e   :  { %v2580_v54 = vpop.xlane.xlu1 %2579 }
 0x54f   :  { %v2582_v55 = vmul.f32 0.00390625, %v2580_v54 }
 0x551   :  { %v2583_v56 = vsub.f32 %v3204_v43, %v2582_v55  ;;  %v2584_v57 = vsub.f32 %v3205_v45, %v2582_v55 }
 0x553   :  { %v2585_v58 = vmul.f32 %v2583_v56, %v2583_v56  ;;  %v2586_v59 = vmul.f32 %v2584_v57, %v2584_v57 }
 0x555   :  { %v2587_v13 = vadd.f32 %v2586_v59, %v2585_v58 }
 0x557   :  { %2588 = vadd.xlane.f32.xlu1 %v2587_v13 }
 0x5e4   :  { %v2589_v5 = vpop.xlane.xlu1 %2588 }
 0x5e5   :  { %v2590_v8 = vmul.f32 0.00390625, %v2589_v5 }
 0x5e7   :  { %v2591_v9 = vadd.f32 1e-05, %v2590_v8 }
 0x5e9   :  { %3747 = vrsqrt.f32 %v2591_v9 }
 0x5f3   :  { %v3748_v15 = vpop.eup %3747 }
 0x5f4   :  { %v2594_v16 = vmul.f32 %v3748_v15, %v2584_v57  ;;  %v2593_v22 = vmul.f32 %v3748_v15, %v2583_v56 }
 0x5f6   :  { %v2607_v23 = vmul.f32 %v2603_v14, %v2594_v16  ;;  %v2606_v24 = vmul.f32 %v2599_v12, %v2593_v22 }
 0x5f8   :  { %v2620_v26 = vadd.f32 %v2616_v20, %v2607_v23  ;;  %v2619_v6 = vadd.f32 %v2612_v17, %v2606_v24 }
 0x5fa   :  { %v2622_v28 = vmax.f32 %v2620_v26, 0.0  ;;  %v2621_v29 = vmax.f32 %v2619_v6, 0.0 }
 0x5fc   :  { %v2624_v7 = vpack.c.bf16 %v2622_v28, %v2622_v28  ;;  %v2623_v30 = vpack.c.bf16 %v2621_v29, %v2621_v29 }
 0x5fe   :  { %2792 = vmatprep.mubr.bf16.mxu1 %v2624_v7 }
 0x5ff   :  { %2793 = vmatmul.mubr.bf16.vlgmr.msra.gmra.mrb[8].mxu1 %v2623_v30 }
 0x6d2   :  { %v3192_v31 = vpop.f32.mrb[8].mxu1 }
 0x6d3   :  { %v3193_v21 = vpop.f32.mrb[9].mxu1 }
 0x6d4   :  { %v3194_v27 = vadd.f32 %v3193_v21, %v3192_v31  ;;  %v3195_v32 = vpop.f32.mrb[10].mxu1 }
 0x6d5   :  { %v3196_v51 = vpop.f32.mrb[11].mxu1 }
 0x6d6   :  { %v2795_v33 = vadd.f32 %v3194_v27, %v3159_v18 }
 0x6d8   :  { %v2803_v37 = vsel %vm2802_vm0, %v2795_v33, -1e+30 }
 0x6d9   :  { %2804 = vmax.xlane.f32.xlu0 %v2803_v37 }
 0x766   :  { %v2805_v38 = vpop.xlane.xlu0 %2804 }
 0x767   :  { %v2806_v39 = vsub.f32 %v2803_v37, %v2805_v38 }
 0x769   :  { %v2807_v40 = vmul.f32 1.442695, %v2806_v39 }
 0x76b   :  { %3749 = vpow2.f32 %v2807_v40 }
 0x775   :  { %v3750_v41 = vpop.eup %3749 }
 0x776   :  { %2809 = vadd.xlane.f32.xlu1 %v3750_v41 }
 0x803   :  { %v2810_v25 = vpop.xlane.xlu1 %2809 }
 0x804   :  { %3751 = vrcp.f32 %v2810_v25 }
 0x80e   :  { %v3752_v42 = vpop.eup %3751 }
 0x80f   :  { %v2812_v43 = vmul.f32 %v3752_v42, %v3750_v41 }
 0x811   :  { %2813 = vst [vmem:[#allocation10] sm:$0xff] %v2812_v43 }
 0x812   :  { %3852 = shalt.err (!%p3849_p8)
}
 0x813   :  { %s3853_s22 = scalar_lea.hbm %s4109_s11, 128 }
 0x814   :  { %p3854_p9 = scmp.ne.s32.totalorder %s4109_s11, %s3853_s22  ;;  %p3857_p10 = scmp.lt.u32.totalorder %s3853_s22, %s4109_s11 }
 0x816   :  { %p3859_p11 = pnand %p3857_p10, %p3854_p9 }
 0x818   :  { %3862 = shalt.err (!%p3859_p11)
}
 0x819   :  { %2823 = dma.vmem_to_hbm [thread:$0]  %s2821_s19, 128, %s4109_s11, [#allocation4]  }
 0x81a   :  { %3869 = dma.done.wait [#allocation4], 128  }
 0x81b   :  { %3870 = vsyncadd [#allocation4], 4294967168 }
 0x81c   :  { %2827 = vsyncpa [#allocation3], 1 }
 0x81d   :  { %2828 = vsyncpa [#allocation6], 1 }
 0x81e   :  { %2829 = vsyncpa [#allocation9], 1 }
 0x81f   :  { %2830 = vsyncpa [#allocation4], 1 }

</bundles_post_ra>
